<compile_context>
chip_gen: v6e
topology: v6e:2x2x1
jax: 0.10.0
libtpu: 0.0.40
codegen_flags: <defaults>
</compile_context>

<pallas_src>
import functools
import math

import jax
import jax.numpy as jnp
from jax.experimental import pallas as pl
from jax.experimental.pallas import tpu as pltpu


def _round_up(x, m):
    return (x + m - 1) // m * m


def _cdiv(a, b):
    return (a + b - 1) // b


# ----------------------------- Pallas kernels --------------------------------


def _conv_bn_stats_kernel(x_ref, w_ref, y_ref, stats_ref, *,
                          k_size, stride, t_ph, t_blk, vp, v, c_out):
    """One (batch, T-tile) block of the temporal conv + BN partial stats.

    x_ref:     (1, stride*T_ph, Vp, Cin)  bf16  phase-major padded input
    w_ref:     (K, Cin, Cout_pad)         bf16  per-tap weights (lane-padded)
    y_ref:     (1, t_blk, V, Cout)        bf16  conv output (unpadded store)
    stats_ref: (1, 1, 2, Cout)            f32   row0 = sum, row1 = sum of squares
    """
    tb = pl.program_id(1)
    c_in = x_ref.shape[-1]
    c_out_p = w_ref.shape[-1]
    rows = t_blk * vp
    t0 = pl.multiple_of(tb * t_blk, t_blk)

    # K accumulating MXU matmuls (no materialized im2col / lane concatenate).
    # Each tap is a contiguous sublane window thanks to the phase-major layout.
    acc = None
    for k in range(k_size):                                   # static, unrolled
        start = (k % stride) * t_ph + t0 + (k // stride)
        win = x_ref[0, pl.ds(start, t_blk), :, :]             # (t_blk, Vp, Cin)
        part = jnp.dot(win.reshape(rows, c_in), w_ref[k],
                       preferred_element_type=jnp.float32)
        acc = part if acc is None else acc + part             # f32 accumulator

    # BN partial statistics in f32, before the bf16 downcast. Zero-padded T / V
    # rows and zero-padded weight lanes contribute exactly 0 (no conv bias in
    # the kernel), so no masking is needed.
    s = jnp.sum(acc, axis=0, keepdims=True)                   # (1, Cout_pad)
    q = jnp.sum(acc * acc, axis=0, keepdims=True)
    stats_ref[0, 0, 0:1, :] = s[:, :c_out]
    stats_ref[0, 0, 1:2, :] = q[:, :c_out]

    y = acc.reshape(t_blk, vp, c_out_p)[:, :v, :c_out]        # unpadded store
    y_ref[0] = y.astype(y_ref.dtype)


def _bn_affine_kernel(y_ref, scale_ref, shift_ref, o_ref):
    """o = y * scale + shift (per channel); math in f32 (no bf16 VPU on v5e)."""
    o_ref[0] = (y_ref[0].astype(jnp.float32) * scale_ref[0]
                + shift_ref[0]).astype(o_ref.dtype)


# ------------------------------ JAX wrapper -----------------------------------


def unit_tcn_forward(x_nchw, w_oihw, conv_bias, gamma, beta, *,
                     eps=1e-5, stride=1):
    """Matches unit_tcn.forward: bn(conv(x)) with BatchNorm2d in training mode
    (batch mean / biased variance -- the behaviour of a fresh module).

    x_nchw: (N, Cin, T, V); w_oihw: (Cout, Cin, K, 1). Returns (N, Cout, T_out, V).
    The conv bias cancels exactly under training-mode BN (the batch mean absorbs
    it), so it is folded away instead of being added in the hot kernel.
    """
    del conv_bias  # exactly cancelled by the batch-mean subtraction below
    n, c_in, t, v = x_nchw.shape
    c_out, _, k_size, _ = w_oihw.shape
    pad = (k_size - 1) // 2
    t_out = (t + 2 * pad - k_size) // stride + 1

    vp = _round_up(v, 8)               # sublane-aligned vertex axis (input only)
    c_out_p = _round_up(c_out, 128)    # lane-dense matmul accumulator width

    # --- T tiling: fixed row target (multiple of 8), no divisor requirement ---
    rows_cap = 2048                    # 1-2K output rows feeds the MXU on v5e..v7x
    t_blk = max(8, (rows_cap // vp) // 8 * 8)
    if t_blk >= t_out:
        t_blk = t_out                  # single full-extent block

    def _vmem_est(tb):                 # rough per-step VMEM audit (bytes)
        t_out_pad_ = _cdiv(t_out, tb) * tb
        t_ph_ = t_out_pad_ + (k_size - 1) // stride
        return (2 * stride * t_ph_ * vp * c_in * 2      # x block, double buffered
                + 2 * k_size * c_in * c_out_p * 2       # weights
                + 2 * tb * v * c_out * 2                # y block
                + 2 * 2 * c_out * 4                     # stats block
                + tb * vp * c_out_p * 4                 # f32 accumulator
                + 2 * tb * vp * c_in * 2                # tap windows in flight
                + (2 << 20))
    while t_blk > 8 and _vmem_est(t_blk) > (40 << 20):
        t_blk = max(8, (t_blk // 2) // 8 * 8)

    n_tb = _cdiv(t_out, t_blk)
    t_out_pad = n_tb * t_blk           # tail rows beyond t_out compute exact zeros

    # --- input prep: NCHW -> phase-major channels-last, zero pad, bf16 --------
    # phase-major: time index i maps to (phase p = i % stride, row q = i // stride)
    # stored as [p * T_ph + q], so every tap k reads a contiguous sublane window.
    t_ph = t_out_pad + (k_size - 1) // stride
    l_time = t_ph * stride             # >= t + 2*pad by construction
    x_cl = jnp.transpose(x_nchw, (0, 2, 3, 1))               # (N, T, V, Cin)
    x_pad = jnp.pad(x_cl, ((0, 0), (pad, l_time - pad - t), (0, vp - v), (0, 0)))
    x_ph = x_pad.reshape(n, t_ph, stride, vp, c_in)
    x_ph = jnp.transpose(x_ph, (0, 2, 1, 3, 4))
    x_ph = x_ph.reshape(n, stride * t_ph, vp, c_in).astype(jnp.bfloat16)

    # (Cout, Cin, K, 1) -> (K, Cin, Cout_pad) bf16 (lane-padded for the MXU)
    w_k = jnp.transpose(w_oihw[..., 0], (2, 1, 0))
    w_k = jnp.pad(w_k, ((0, 0), (0, 0), (0, c_out_p - c_out))).astype(jnp.bfloat16)

    conv_kernel = functools.partial(
        _conv_bn_stats_kernel, k_size=k_size, stride=stride, t_ph=t_ph,
        t_blk=t_blk, vp=vp, v=v, c_out=c_out)
    vmem_limit = int(min(max(2 * _vmem_est(t_blk), 32 << 20), 56 << 20))

    y, stats = pl.pallas_call(
        conv_kernel,
        out_shape=(
            jax.ShapeDtypeStruct((n, t_out_pad, v, c_out), jnp.bfloat16),
            jax.ShapeDtypeStruct((n, n_tb, 2, c_out), jnp.float32),
        ),
        grid_spec=pltpu.PrefetchScalarGridSpec(
            num_scalar_prefetch=0,
            grid=(n, n_tb),
            in_specs=[
                # full (padded, phase-major) time axis per batch element;
                # constant across the T-tile axis -> fetched once per batch.
                pl.BlockSpec((1, stride * t_ph, vp, c_in),
                             lambda i, j: (i, 0, 0, 0)),
                pl.BlockSpec((k_size, c_in, c_out_p), lambda i, j: (0, 0, 0)),
            ],
            out_specs=(
                pl.BlockSpec((1, t_blk, v, c_out), lambda i, j: (i, j, 0, 0)),
                pl.BlockSpec((1, 1, 2, c_out), lambda i, j: (i, j, 0, 0)),
            ),
        ),
        compiler_params=pltpu.CompilerParams(
            dimension_semantics=("parallel", "parallel"),
            vmem_limit_bytes=vmem_limit),
    )(x_ph, w_k)

    # --- finish BN statistics on the tiny (N, n_tb, 2, Cout) partials ---------
    # NOTE: single-pass E[x^2]-E[x]^2 in f32; fine for conv outputs (near-zero
    # mean) but less robust than two-pass variance for large-mean activations.
    count = n * t_out * v
    sum_c = jnp.sum(stats[:, :, 0, :], axis=(0, 1))
    ssq_c = jnp.sum(stats[:, :, 1, :], axis=(0, 1))
    mean = sum_c / count
    var = jnp.maximum(ssq_c / count - mean * mean, 0.0)       # biased, torch-style
    scale = gamma.astype(jnp.float32) / jnp.sqrt(var + eps)
    shift = beta.astype(jnp.float32) - mean * scale
    # TODO(synk): nn.BatchNorm2d's running_mean/running_var update (a stateful
    # training-time side effect) and eval-mode (running-stats) normalization are
    # not reproduced here.

    out_cl = pl.pallas_call(
        _bn_affine_kernel,
        out_shape=jax.ShapeDtypeStruct((n, t_out_pad, v, c_out), jnp.float32),
        grid_spec=pltpu.PrefetchScalarGridSpec(
            num_scalar_prefetch=0,
            grid=(n, n_tb),
            in_specs=[
                pl.BlockSpec((1, t_blk, v, c_out), lambda i, j: (i, j, 0, 0)),
                pl.BlockSpec((1, c_out), lambda i, j: (0, 0)),
                pl.BlockSpec((1, c_out), lambda i, j: (0, 0)),
            ],
            out_specs=pl.BlockSpec((1, t_blk, v, c_out),
                                   lambda i, j: (i, j, 0, 0)),
        ),
        compiler_params=pltpu.CompilerParams(
            dimension_semantics=("parallel", "parallel")),
    )(y, scale.reshape(1, c_out), shift.reshape(1, c_out))

    # The module's NCHW contract forces one layout-change pass; it now runs over
    # the UNPADDED activation and fuses the T-tail strip. In a stacked CTRGCN
    # you would keep the channels-last layout and skip this entirely.
    return jnp.transpose(out_cl[:, :t_out], (0, 3, 1, 2))


# -------------------------------- reference -----------------------------------


def reference(x, w, bias, gamma, beta, *, eps, stride, pad):
    y = jax.lax.conv_general_dilated(
        x, w, window_strides=(stride, 1), padding=((pad, pad), (0, 0)),
        dimension_numbers=("NCHW", "OIHW", "NCHW"))
    y = y + bias.reshape(1, -1, 1, 1)
    mean = jnp.mean(y, axis=(0, 2, 3), keepdims=True)
    var = jnp.var(y, axis=(0, 2, 3), keepdims=True)          # biased, torch-style
    return ((y - mean) / jnp.sqrt(var + eps)) * gamma.reshape(1, -1, 1, 1) \
        + beta.reshape(1, -1, 1, 1)


# ----------------------------------- main --------------------------------------


if __name__ == "__main__":
    eps = 1e-5
    cases = [
        # small module-default case (stride 1, tiny channels)
        dict(n=2, c_in=4, t=16, v=16, c_out=8, k=9, stride=1, tol=2e-2),
        # stride-2 downsampling case with CTRGCN-like V=25 and aligned channels
        dict(n=2, c_in=128, t=24, v=25, c_out=128, k=9, stride=2, tol=3e-2),
    ]

    key = jax.random.PRNGKey(0)
    for idx, cfg in enumerate(cases):
        key, kx, kw, kb, kg = jax.random.split(key, 5)
        n, c_in, t, v = cfg["n"], cfg["c_in"], cfg["t"], cfg["v"]
        c_out, k_size, stride = cfg["c_out"], cfg["k"], cfg["stride"]
        pad = (k_size - 1) // 2

        x = jax.random.normal(kx, (n, c_in, t, v), jnp.float32)
        # conv_init: kaiming_normal_(mode='fan_out') -> std = sqrt(2 / (Cout*K*1))
        fan_out = c_out * k_size * 1
        w = math.sqrt(2.0 / fan_out) * jax.random.normal(
            kw, (c_out, c_in, k_size, 1), jnp.float32)
        if idx == 0:
            bias = jnp.zeros((c_out,), jnp.float32)          # conv_init: bias = 0
            gamma = jnp.ones((c_out,), jnp.float32)          # bn_init(bn, 1)
            beta = jnp.zeros((c_out,), jnp.float32)
        else:
            # nonzero bias exercises the "bias cancels under batch-norm" fold;
            # non-trivial gamma/beta exercise the affine epilogue.
            bias = 0.1 * jax.random.normal(kb, (c_out,), jnp.float32)
            gamma = 1.0 + 0.1 * jax.random.normal(kg, (c_out,), jnp.float32)
            beta = 0.1 * jax.random.normal(kb, (c_out,), jnp.float32)

        out = unit_tcn_forward(x, w, bias, gamma, beta, eps=eps, stride=stride)
        out = jax.block_until_ready(out)

        ref = reference(x, w, bias, gamma, beta, eps=eps, stride=stride, pad=pad)
        t_out = (t + 2 * pad - k_size) // stride + 1
        assert out.shape == ref.shape == (n, c_out, t_out, v), (out.shape, ref.shape)
        max_err = float(jnp.max(jnp.abs(out - ref)))
        # bf16 intermediates -> compare at bf16-level tolerance vs the f32 ref
        assert jnp.allclose(out, ref, atol=cfg["tol"], rtol=cfg["tol"]), max_err

    print("KERNEL_OK")
</pallas_src>

<mosaic_0001>
module attributes {stable_mosaic.version = 11 : i64} {
  func.func @_conv_bn_stats_kernel(%arg0: i32, %arg1: i32, %arg2: memref<1x24x16x4xbf16, #tpu.memory_space<vmem>>, %arg3: memref<9x4x128xbf16, #tpu.memory_space<vmem>>, %arg4: memref<1x16x16x8xbf16, #tpu.memory_space<vmem>>, %arg5: memref<1x1x2x8xf32, #tpu.memory_space<vmem>>) attributes {dimension_semantics = [#tpu.dimension_semantics<parallel>, #tpu.dimension_semantics<parallel>], iteration_bounds = array<i64: 2, 1>, scalar_prefetch = 0 : i64, scratch_operands = 0 : i64, tpu.core_type = #tpu.core_type<tc>, window_params = [{transform_indices = @transform_0, window_bounds = array<i64: 1, 24, 16, 4>}, {pipeline_mode = #tpu.pipeline_mode<synchronous>, transform_indices = @transform_1, window_bounds = array<i64: 9, 4, 128>}, {transform_indices = @transform_2, window_bounds = array<i64: 1, 16, 16, 8>}, {transform_indices = @transform_3, window_bounds = array<i64: 1, 1, 2, 8>}]} {
    %c16_i32 = arith.constant 16 : i32
    %0 = arith.muli %arg1, %c16_i32 : i32
    %1 = tpu.assume_multiple %0, 16 : i32
    %c0_i32 = arith.constant 0 : i32
    %2 = arith.addi %c0_i32, %1 : i32
    %c0_i32_0 = arith.constant 0 : i32
    %3 = arith.addi %2, %c0_i32_0 : i32
    %c0 = arith.constant 0 : index
    %4 = arith.index_cast %3 : i32 to index
    %c0_1 = arith.constant 0 : index
    %c0_2 = arith.constant 0 : index
    %5 = vector.load %arg2[%c0, %4, %c0_1, %c0_2] : memref<1x24x16x4xbf16, #tpu.memory_space<vmem>>, vector<1x16x16x4xbf16>
    %6 = vector.shape_cast %5 : vector<1x16x16x4xbf16> to vector<16x16x4xbf16>
    %7 = vector.shape_cast %6 : vector<16x16x4xbf16> to vector<256x4xbf16>
    %c0_3 = arith.constant 0 : index
    %c0_4 = arith.constant 0 : index
    %c0_5 = arith.constant 0 : index
    %8 = vector.load %arg3[%c0_3, %c0_4, %c0_5] : memref<9x4x128xbf16, #tpu.memory_space<vmem>>, vector<1x4x128xbf16>
    %9 = vector.shape_cast %8 : vector<1x4x128xbf16> to vector<4x128xbf16>
    %cst = arith.constant dense<0.000000e+00> : vector<256x128xf32>
    %10 = tpu.matmul %7, %9, %cst {dimension_numbers = #tpu.dot_dimension_numbers<[1], [0], [0], [1], [0, 0, 1, 1], [], []>} : vector<256x4xbf16>, vector<4x128xbf16>, vector<256x128xf32> -> vector<256x128xf32>
    %c0_i32_6 = arith.constant 0 : i32
    %11 = arith.addi %c0_i32_6, %1 : i32
    %c1_i32 = arith.constant 1 : i32
    %12 = arith.addi %11, %c1_i32 : i32
    %c0_7 = arith.constant 0 : index
    %13 = arith.index_cast %12 : i32 to index
    %c0_8 = arith.constant 0 : index
    %c0_9 = arith.constant 0 : index
    %14 = vector.load %arg2[%c0_7, %13, %c0_8, %c0_9] : memref<1x24x16x4xbf16, #tpu.memory_space<vmem>>, vector<1x16x16x4xbf16>
    %15 = vector.shape_cast %14 : vector<1x16x16x4xbf16> to vector<16x16x4xbf16>
    %16 = vector.shape_cast %15 : vector<16x16x4xbf16> to vector<256x4xbf16>
    %c1 = arith.constant 1 : index
    %c0_10 = arith.constant 0 : index
    %c0_11 = arith.constant 0 : index
    %17 = vector.load %arg3[%c1, %c0_10, %c0_11] : memref<9x4x128xbf16, #tpu.memory_space<vmem>>, vector<1x4x128xbf16>
    %18 = vector.shape_cast %17 : vector<1x4x128xbf16> to vector<4x128xbf16>
    %cst_12 = arith.constant dense<0.000000e+00> : vector<256x128xf32>
    %19 = tpu.matmul %16, %18, %cst_12 {dimension_numbers = #tpu.dot_dimension_numbers<[1], [0], [0], [1], [0, 0, 1, 1], [], []>} : vector<256x4xbf16>, vector<4x128xbf16>, vector<256x128xf32> -> vector<256x128xf32>
    %20 = arith.addf %10, %19 : vector<256x128xf32>
    %c0_i32_13 = arith.constant 0 : i32
    %21 = arith.addi %c0_i32_13, %1 : i32
    %c2_i32 = arith.constant 2 : i32
    %22 = arith.addi %21, %c2_i32 : i32
    %c0_14 = arith.constant 0 : index
    %23 = arith.index_cast %22 : i32 to index
    %c0_15 = arith.constant 0 : index
    %c0_16 = arith.constant 0 : index
    %24 = vector.load %arg2[%c0_14, %23, %c0_15, %c0_16] : memref<1x24x16x4xbf16, #tpu.memory_space<vmem>>, vector<1x16x16x4xbf16>
    %25 = vector.shape_cast %24 : vector<1x16x16x4xbf16> to vector<16x16x4xbf16>
    %26 = vector.shape_cast %25 : vector<16x16x4xbf16> to vector<256x4xbf16>
    %c2 = arith.constant 2 : index
    %c0_17 = arith.constant 0 : index
    %c0_18 = arith.constant 0 : index
    %27 = vector.load %arg3[%c2, %c0_17, %c0_18] : memref<9x4x128xbf16, #tpu.memory_space<vmem>>, vector<1x4x128xbf16>
    %28 = vector.shape_cast %27 : vector<1x4x128xbf16> to vector<4x128xbf16>
    %cst_19 = arith.constant dense<0.000000e+00> : vector<256x128xf32>
    %29 = tpu.matmul %26, %28, %cst_19 {dimension_numbers = #tpu.dot_dimension_numbers<[1], [0], [0], [1], [0, 0, 1, 1], [], []>} : vector<256x4xbf16>, vector<4x128xbf16>, vector<256x128xf32> -> vector<256x128xf32>
    %30 = arith.addf %20, %29 : vector<256x128xf32>
    %c0_i32_20 = arith.constant 0 : i32
    %31 = arith.addi %c0_i32_20, %1 : i32
    %c3_i32 = arith.constant 3 : i32
    %32 = arith.addi %31, %c3_i32 : i32
    %c0_21 = arith.constant 0 : index
    %33 = arith.index_cast %32 : i32 to index
    %c0_22 = arith.constant 0 : index
    %c0_23 = arith.constant 0 : index
    %34 = vector.load %arg2[%c0_21, %33, %c0_22, %c0_23] : memref<1x24x16x4xbf16, #tpu.memory_space<vmem>>, vector<1x16x16x4xbf16>
    %35 = vector.shape_cast %34 : vector<1x16x16x4xbf16> to vector<16x16x4xbf16>
    %36 = vector.shape_cast %35 : vector<16x16x4xbf16> to vector<256x4xbf16>
    %c3 = arith.constant 3 : index
    %c0_24 = arith.constant 0 : index
    %c0_25 = arith.constant 0 : index
    %37 = vector.load %arg3[%c3, %c0_24, %c0_25] : memref<9x4x128xbf16, #tpu.memory_space<vmem>>, vector<1x4x128xbf16>
    %38 = vector.shape_cast %37 : vector<1x4x128xbf16> to vector<4x128xbf16>
    %cst_26 = arith.constant dense<0.000000e+00> : vector<256x128xf32>
    %39 = tpu.matmul %36, %38, %cst_26 {dimension_numbers = #tpu.dot_dimension_numbers<[1], [0], [0], [1], [0, 0, 1, 1], [], []>} : vector<256x4xbf16>, vector<4x128xbf16>, vector<256x128xf32> -> vector<256x128xf32>
    %40 = arith.addf %30, %39 : vector<256x128xf32>
    %c0_i32_27 = arith.constant 0 : i32
    %41 = arith.addi %c0_i32_27, %1 : i32
    %c4_i32 = arith.constant 4 : i32
    %42 = arith.addi %41, %c4_i32 : i32
    %c0_28 = arith.constant 0 : index
    %43 = arith.index_cast %42 : i32 to index
    %c0_29 = arith.constant 0 : index
    %c0_30 = arith.constant 0 : index
    %44 = vector.load %arg2[%c0_28, %43, %c0_29, %c0_30] : memref<1x24x16x4xbf16, #tpu.memory_space<vmem>>, vector<1x16x16x4xbf16>
    %45 = vector.shape_cast %44 : vector<1x16x16x4xbf16> to vector<16x16x4xbf16>
    %46 = vector.shape_cast %45 : vector<16x16x4xbf16> to vector<256x4xbf16>
    %c4 = arith.constant 4 : index
    %c0_31 = arith.constant 0 : index
    %c0_32 = arith.constant 0 : index
    %47 = vector.load %arg3[%c4, %c0_31, %c0_32] : memref<9x4x128xbf16, #tpu.memory_space<vmem>>, vector<1x4x128xbf16>
    %48 = vector.shape_cast %47 : vector<1x4x128xbf16> to vector<4x128xbf16>
    %cst_33 = arith.constant dense<0.000000e+00> : vector<256x128xf32>
    %49 = tpu.matmul %46, %48, %cst_33 {dimension_numbers = #tpu.dot_dimension_numbers<[1], [0], [0], [1], [0, 0, 1, 1], [], []>} : vector<256x4xbf16>, vector<4x128xbf16>, vector<256x128xf32> -> vector<256x128xf32>
    %50 = arith.addf %40, %49 : vector<256x128xf32>
    %c0_i32_34 = arith.constant 0 : i32
    %51 = arith.addi %c0_i32_34, %1 : i32
    %c5_i32 = arith.constant 5 : i32
    %52 = arith.addi %51, %c5_i32 : i32
    %c0_35 = arith.constant 0 : index
    %53 = arith.index_cast %52 : i32 to index
    %c0_36 = arith.constant 0 : index
    %c0_37 = arith.constant 0 : index
    %54 = vector.load %arg2[%c0_35, %53, %c0_36, %c0_37] : memref<1x24x16x4xbf16, #tpu.memory_space<vmem>>, vector<1x16x16x4xbf16>
    %55 = vector.shape_cast %54 : vector<1x16x16x4xbf16> to vector<16x16x4xbf16>
    %56 = vector.shape_cast %55 : vector<16x16x4xbf16> to vector<256x4xbf16>
    %c5 = arith.constant 5 : index
    %c0_38 = arith.constant 0 : index
    %c0_39 = arith.constant 0 : index
    %57 = vector.load %arg3[%c5, %c0_38, %c0_39] : memref<9x4x128xbf16, #tpu.memory_space<vmem>>, vector<1x4x128xbf16>
    %58 = vector.shape_cast %57 : vector<1x4x128xbf16> to vector<4x128xbf16>
    %cst_40 = arith.constant dense<0.000000e+00> : vector<256x128xf32>
    %59 = tpu.matmul %56, %58, %cst_40 {dimension_numbers = #tpu.dot_dimension_numbers<[1], [0], [0], [1], [0, 0, 1, 1], [], []>} : vector<256x4xbf16>, vector<4x128xbf16>, vector<256x128xf32> -> vector<256x128xf32>
    %60 = arith.addf %50, %59 : vector<256x128xf32>
    %c0_i32_41 = arith.constant 0 : i32
    %61 = arith.addi %c0_i32_41, %1 : i32
    %c6_i32 = arith.constant 6 : i32
    %62 = arith.addi %61, %c6_i32 : i32
    %c0_42 = arith.constant 0 : index
    %63 = arith.index_cast %62 : i32 to index
    %c0_43 = arith.constant 0 : index
    %c0_44 = arith.constant 0 : index
    %64 = vector.load %arg2[%c0_42, %63, %c0_43, %c0_44] : memref<1x24x16x4xbf16, #tpu.memory_space<vmem>>, vector<1x16x16x4xbf16>
    %65 = vector.shape_cast %64 : vector<1x16x16x4xbf16> to vector<16x16x4xbf16>
    %66 = vector.shape_cast %65 : vector<16x16x4xbf16> to vector<256x4xbf16>
    %c6 = arith.constant 6 : index
    %c0_45 = arith.constant 0 : index
    %c0_46 = arith.constant 0 : index
    %67 = vector.load %arg3[%c6, %c0_45, %c0_46] : memref<9x4x128xbf16, #tpu.memory_space<vmem>>, vector<1x4x128xbf16>
    %68 = vector.shape_cast %67 : vector<1x4x128xbf16> to vector<4x128xbf16>
    %cst_47 = arith.constant dense<0.000000e+00> : vector<256x128xf32>
    %69 = tpu.matmul %66, %68, %cst_47 {dimension_numbers = #tpu.dot_dimension_numbers<[1], [0], [0], [1], [0, 0, 1, 1], [], []>} : vector<256x4xbf16>, vector<4x128xbf16>, vector<256x128xf32> -> vector<256x128xf32>
    %70 = arith.addf %60, %69 : vector<256x128xf32>
    %c0_i32_48 = arith.constant 0 : i32
    %71 = arith.addi %c0_i32_48, %1 : i32
    %c7_i32 = arith.constant 7 : i32
    %72 = arith.addi %71, %c7_i32 : i32
    %c0_49 = arith.constant 0 : index
    %73 = arith.index_cast %72 : i32 to index
    %c0_50 = arith.constant 0 : index
    %c0_51 = arith.constant 0 : index
    %74 = vector.load %arg2[%c0_49, %73, %c0_50, %c0_51] : memref<1x24x16x4xbf16, #tpu.memory_space<vmem>>, vector<1x16x16x4xbf16>
    %75 = vector.shape_cast %74 : vector<1x16x16x4xbf16> to vector<16x16x4xbf16>
    %76 = vector.shape_cast %75 : vector<16x16x4xbf16> to vector<256x4xbf16>
    %c7 = arith.constant 7 : index
    %c0_52 = arith.constant 0 : index
    %c0_53 = arith.constant 0 : index
    %77 = vector.load %arg3[%c7, %c0_52, %c0_53] : memref<9x4x128xbf16, #tpu.memory_space<vmem>>, vector<1x4x128xbf16>
    %78 = vector.shape_cast %77 : vector<1x4x128xbf16> to vector<4x128xbf16>
    %cst_54 = arith.constant dense<0.000000e+00> : vector<256x128xf32>
    %79 = tpu.matmul %76, %78, %cst_54 {dimension_numbers = #tpu.dot_dimension_numbers<[1], [0], [0], [1], [0, 0, 1, 1], [], []>} : vector<256x4xbf16>, vector<4x128xbf16>, vector<256x128xf32> -> vector<256x128xf32>
    %80 = arith.addf %70, %79 : vector<256x128xf32>
    %c0_i32_55 = arith.constant 0 : i32
    %81 = arith.addi %c0_i32_55, %1 : i32
    %c8_i32 = arith.constant 8 : i32
    %82 = arith.addi %81, %c8_i32 : i32
    %c0_56 = arith.constant 0 : index
    %83 = arith.index_cast %82 : i32 to index
    %c0_57 = arith.constant 0 : index
    %c0_58 = arith.constant 0 : index
    %84 = vector.load %arg2[%c0_56, %83, %c0_57, %c0_58] : memref<1x24x16x4xbf16, #tpu.memory_space<vmem>>, vector<1x16x16x4xbf16>
    %85 = vector.shape_cast %84 : vector<1x16x16x4xbf16> to vector<16x16x4xbf16>
    %86 = vector.shape_cast %85 : vector<16x16x4xbf16> to vector<256x4xbf16>
    %c8 = arith.constant 8 : index
    %c0_59 = arith.constant 0 : index
    %c0_60 = arith.constant 0 : index
    %87 = vector.load %arg3[%c8, %c0_59, %c0_60] : memref<9x4x128xbf16, #tpu.memory_space<vmem>>, vector<1x4x128xbf16>
    %88 = vector.shape_cast %87 : vector<1x4x128xbf16> to vector<4x128xbf16>
    %cst_61 = arith.constant dense<0.000000e+00> : vector<256x128xf32>
    %89 = tpu.matmul %86, %88, %cst_61 {dimension_numbers = #tpu.dot_dimension_numbers<[1], [0], [0], [1], [0, 0, 1, 1], [], []>} : vector<256x4xbf16>, vector<4x128xbf16>, vector<256x128xf32> -> vector<256x128xf32>
    %90 = arith.addf %80, %89 : vector<256x128xf32>
    %cst_62 = arith.constant dense<0.000000e+00> : vector<128xf32>
    %91 = vector.multi_reduction <add>, %90, %cst_62 [0] : vector<256x128xf32> to vector<128xf32>
    %92 = vector.shape_cast %91 : vector<128xf32> to vector<1x128xf32>
    %93 = arith.mulf %90, %90 : vector<256x128xf32>
    %cst_63 = arith.constant dense<0.000000e+00> : vector<128xf32>
    %94 = vector.multi_reduction <add>, %93, %cst_63 [0] : vector<256x128xf32> to vector<128xf32>
    %95 = vector.shape_cast %94 : vector<128xf32> to vector<1x128xf32>
    %96 = vector.extract_strided_slice %92 {offsets = [0, 0], sizes = [1, 8], strides = [1, 1]} : vector<1x128xf32> to vector<1x8xf32>
    %c0_64 = arith.constant 0 : index
    %c0_65 = arith.constant 0 : index
    %c0_66 = arith.constant 0 : index
    %c0_67 = arith.constant 0 : index
    %97 = vector.load %arg5[%c0_64, %c0_65, %c0_66, %c0_67] : memref<1x1x2x8xf32, #tpu.memory_space<vmem>>, vector<1x1x1x8xf32>
    %98 = vector.shape_cast %97 : vector<1x1x1x8xf32> to vector<1x8xf32>
    %99 = vector.shape_cast %96 : vector<1x8xf32> to vector<1x1x1x8xf32>
    tpu.vector_store %arg5[%c0_64, %c0_65, %c0_66, %c0_67], %99 {strides = array<i32>} : memref<1x1x2x8xf32, #tpu.memory_space<vmem>>, vector<1x1x1x8xf32>,
    %100 = vector.extract_strided_slice %95 {offsets = [0, 0], sizes = [1, 8], strides = [1, 1]} : vector<1x128xf32> to vector<1x8xf32>
    %c0_68 = arith.constant 0 : index
    %c0_69 = arith.constant 0 : index
    %c1_70 = arith.constant 1 : index
    %c0_71 = arith.constant 0 : index
    %101 = vector.load %arg5[%c0_68, %c0_69, %c1_70, %c0_71] : memref<1x1x2x8xf32, #tpu.memory_space<vmem>>, vector<1x1x1x8xf32>
    %102 = vector.shape_cast %101 : vector<1x1x1x8xf32> to vector<1x8xf32>
    %103 = vector.shape_cast %100 : vector<1x8xf32> to vector<1x1x1x8xf32>
    tpu.vector_store %arg5[%c0_68, %c0_69, %c1_70, %c0_71], %103 {strides = array<i32>} : memref<1x1x2x8xf32, #tpu.memory_space<vmem>>, vector<1x1x1x8xf32>,
    %104 = vector.shape_cast %90 : vector<256x128xf32> to vector<16x16x128xf32>
    %105 = vector.extract_strided_slice %104 {offsets = [0, 0, 0], sizes = [16, 16, 8], strides = [1, 1, 1]} : vector<16x16x128xf32> to vector<16x16x8xf32>
    %106 = arith.truncf %105 : vector<16x16x8xf32> to vector<16x16x8xbf16>
    %c0_72 = arith.constant 0 : index
    %c0_73 = arith.constant 0 : index
    %c0_74 = arith.constant 0 : index
    %c0_75 = arith.constant 0 : index
    %107 = vector.load %arg4[%c0_72, %c0_73, %c0_74, %c0_75] : memref<1x16x16x8xbf16, #tpu.memory_space<vmem>>, vector<1x16x16x8xbf16>
    %108 = vector.shape_cast %107 : vector<1x16x16x8xbf16> to vector<16x16x8xbf16>
    %109 = vector.shape_cast %106 : vector<16x16x8xbf16> to vector<1x16x16x8xbf16>
    tpu.vector_store %arg4[%c0_72, %c0_73, %c0_74, %c0_75], %109 {strides = array<i32>} : memref<1x16x16x8xbf16, #tpu.memory_space<vmem>>, vector<1x16x16x8xbf16>,
    return
  }
  func.func @transform_0(%arg0: i32, %arg1: i32) -> (i32, i32, i32, i32) {
    %c0_i32 = arith.constant 0 : i32
    %c0_i32_0 = arith.constant 0 : i32
    %c0_i32_1 = arith.constant 0 : i32
    %c0_i32_2 = arith.constant 0 : i32
    return %arg0, %c0_i32, %c0_i32_0, %c0_i32_1 : i32, i32, i32, i32
  }
  func.func @transform_1(%arg0: i32, %arg1: i32) -> (i32, i32, i32) {
    %c0_i32 = arith.constant 0 : i32
    %c0_i32_0 = arith.constant 0 : i32
    %c0_i32_1 = arith.constant 0 : i32
    %c0_i32_2 = arith.constant 0 : i32
    return %c0_i32, %c0_i32_0, %c0_i32_1 : i32, i32, i32
  }
  func.func @transform_2(%arg0: i32, %arg1: i32) -> (i32, i32, i32, i32) {
    %c0_i32 = arith.constant 0 : i32
    %c0_i32_0 = arith.constant 0 : i32
    %c0_i32_1 = arith.constant 0 : i32
    return %arg0, %arg1, %c0_i32, %c0_i32_0 : i32, i32, i32, i32
  }
  func.func @transform_3(%arg0: i32, %arg1: i32) -> (i32, i32, i32, i32) {
    %c0_i32 = arith.constant 0 : i32
    %c0_i32_0 = arith.constant 0 : i32
    %c0_i32_1 = arith.constant 0 : i32
    return %arg0, %arg1, %c0_i32, %c0_i32_0 : i32, i32, i32, i32
  }
}

</mosaic_0001>

<bundles_post_ra>
// kernel: tpu_custom_call.1
= control target key start
LH: loop header
LB: loop body
LE: loop exit
PB: predicated region body
PF: predicated region fallthrough
CT: control target
= control target key end

     0   :  { %9 = vsyncpa [#allocation3], 0  ;;  %s6243_s0 = inlined_call_operand.vmem [shape: bf16[2,24,16,4], index: 0, kind: input, shape index: {}]   ;;  %s6244_s1 = inlined_call_operand.vmem [shape: bf16[9,4,128], index: 1, kind: input, shape index: {}]   ;;  %s6245_s2 = inlined_call_operand.vmem [shape: bf16[2,16,16,8], index: 2, kind: output, shape index: {0}]   ;;  %s6246_s3 = inlined_call_operand.hbm [shape: f32[2,1,2,8], index: 3, kind: output, shape index: {1}]  }
   0x1   :  { %11 = vsyncpa [#allocation3 + $0x1], 0  ;;  %s5248_s12 = smov 0   ;;  %s5250_s13 = smov 0  }
   0x2   :  { %s5252_s14 = smov 0   ;;  %s5254_s15 = smov 0  }
   0x3   :  { %s5256_s16 = smov 0   ;;  %s5258_s17 = smov 0  }
   0x4 LB: > { %s3848_s18 = sadd.s32 4294967295, %s5225_s17   ;;  %s3849_s19 = sadd.s32 4294967294, %s5225_s17   ;;  %s5225_s17 = sphi %s5258_s17, %s17_s17   ;;  %s5221_s16 = sphi %s5256_s16, %s6337_s16   ;;  %s5217_s15 = sphi %s5254_s15, %s6336_s15   ;;  %s5213_s14 = sphi %s5252_s14, %s6335_s14   ;;  %s5209_s13 = sphi %s5250_s13, %s6334_s13   ;;  %s5205_s12 = sphi %s5248_s12, %s6333_s12  }
   0x5   : > { %s29_s20 = sadd.s32 1, %s5221_s16  ;;  %s113_s21 = sadd.s32 1, %s5213_s14 }
   0x6   : > { %p31_p0 = scmp.ge.s32.totalorder %s29_s20, 2  ;;  %p123_p1 = scmp.ne.s32.totalorder %s5213_s14, %s5209_s13 }
   0x7   : > { %p124_p2 = scmp.eq.s32.totalorder %s3848_s18, 1  ;;  %p129_p3 = scmp.ne.s32.totalorder %s5209_s13, %s5205_s12 }
   0x8   : > { %s6339_s20 = smov (%p31_p0, %s29_s20), 0  ;;  %p130_p5 = scmp.eq.s32.totalorder %s3849_s19, 1 }
   0x9   : > { %p5288_p4 = por %p124_p2, %p123_p1  ;;  %s108_s23 = ssub.s32 %s5221_s16, %s6339_s20 }
   0xa   : > { %p3852_p6 = scmp.ge.s32.totalorder %s5225_s17, 1  ;;  %p111_p7 = scmp.eq.s32.totalorder %s108_s23, 0 }
   0xb   : > { %p5295_p8 = por %p130_p5, %p129_p3  ;;  %p159_p9 = scmp.lt.s32.totalorder %s5225_s17, 3 }
   0xc   : > { %s5301_s25 = scalar_select %p111_p7, %s5213_s14, %s113_s21  }
   0xd   : > { %p160_p10 = pnand %p3852_p6, %p159_p9 }
   0xf   : > { %163 = sbr.rel (%p160_p10) target bundleno = 547 (0x223), region = 28 }
  0x14   : > { %v3889_v0 = vld [vmem:[%s6244_s1 + $0x2] sm:$0x3]  ;;  %vm414_vm0 = vcmask 1041408   ;;  %p193_p11 = scmp.lt.s32.totalorder %s5217_s15, 1  ;;  %v246_v2 = vld [vmem:[%s6244_s1] sm:$0x3] }
  0x15   : > { %4940 = vmatprep.subr.msk.bf16.mxu1 %vm414_vm0, %v3889_v0  ;;  %4939 = vmatprep.subr.msk.bf16.mxu0 %vm414_vm0, %v3889_v0  ;;  %v416_v1 = vsel %vm414_vm0, %v3889_v0, 0  ;;  %v3986_v3 = vld [vmem:[%s6244_s1 + $0x4] sm:$0x3]  ;;  %vm365_vm1 = vcmask 31744   ;;  %v4051_v8 = vld [vmem:[%s6244_s1 + $0x6] sm:$0x3] }
  0x16   : > { %4938 = vmatpush3.bf16.msra.mxu1 %v416_v1  ;;  %4632 = vmatpush3.bf16.msra.mxu0 %v416_v1  ;;  %s5317_s5 = scalar_select %p193_p11, %s5217_s15, 1  ;;  %v1038_v7 = vsel %vm414_vm0, %v3986_v3, 0  ;;  %v708_v10 = vsel %vm414_vm0, %v246_v2, 0  ;;  %v4116_v11 = vld [vmem:[%s6244_s1 + $0x8] sm:$0x3]  ;;  %v1400_v30 = vsel %vm414_vm0, %v4051_v8, 0 }
  0x17   : > { %4941 = vmatprep.subr.msk.bf16.mxu1 %vm414_vm0, %v246_v2  ;;  %4942 = vmatprep.subr.msk.bf16.mxu0 %vm414_vm0, %v3986_v3  ;;  %v1762_v28 = vsel %vm414_vm0, %v4116_v11, 0  ;;  %v5383_v32 = vld [vmem:[%s6244_s1 + $0xa] sm:$0x3]  ;;  %v5389_v33 = vld [vmem:[%s6244_s1 + $0xc] sm:$0x3]  ;;  %vm3642_vm2 = vcmask 60416  }
  0x18   : > { %s4949_s6 = smul.u32 192, %s5317_s5  ;;  %v2486_v0 = vsel %vm414_vm0, %v5389_v33, 0  ;;  %v2124_v2 = vsel %vm414_vm0, %v5383_v32, 0  ;;  %vm3511_vm3 = vcmask 57344   ;;  %s4442_s11 = sshll.u32 %s5217_s15, 5 }
  0x19   : > { %s3702_s26 = scalar_lea.hbm %s6246_s3, %s4442_s11  ;;  %s5227_s29 = smov [#allocation2]  }
  0x1a   : > { %s5325_s9 = scalar_lea.vmem %s6243_s0, %s4949_s6  ;;  %s4445_s6 = sshll.u32 %s5317_s5, 7 }
  0x1b   : > { %v5005_v4 = vld [vmem:[%s5325_s9 + $0x8] sm:$0xff]   ;;  %v5007_v6 = vld [vmem:[%s5325_s9 + $0x10] sm:$0xff]   ;;  %v5009_v12 = vld [vmem:[%s5325_s9 + $0x18] sm:$0xff]   ;;  %s190_s5 = sand.u32 1, %s5209_s13   ;;  %s5153_s15 = sshll.u32 %s5227_s29, 4  ;;  %s5154_s15 = int_to_ptr.vmem [resolvable:$false] %s5153_s15 }
  0x1c   : > { %v5006_v5 = vld [vmem:[%s5325_s9 + $0x48] sm:$0xff]   ;;  %4633 = vmatprep.mubr.msk.bf16.mxu0 %vm365_vm1, %v5005_v4  ;;  %v5008_v9 = vld [vmem:[%s5325_s9 + $0x50] sm:$0xff]   ;;  %v5010_v13 = vld [vmem:[%s5325_s9 + $0x58] sm:$0xff]   ;;  %s3853_s10 = sshll.u32 %s190_s5, 1  ;;  %s3686_s27 = scalar_lea.sflag [#allocation3], %s190_s5 }
  0x1d   : > { %4649 = vmatprep.mubr.msk.bf16.mxu1 %vm365_vm1, %v5006_v5  ;;  %4634 = vmatmul.mubr.msk.bf16.vlgmr.msra.gmra.mxu0 %vm365_vm1, %v5007_v6  ;;  %v5011_v14 = vld [vmem:[%s5325_s9 + $0x20] sm:$0xff]   ;;  %v5013_v16 = vld [vmem:[%s5325_s9 + $0x28] sm:$0xff]   ;;  %v5015_v18 = vld [vmem:[%s5325_s9 + $0x30] sm:$0xff]   ;;  %s192_s18 = scalar_lea.vmem [#allocation2], %s3853_s10  ;;  %s5155_s30 = scalar_lea.vmem %s5154_s15, 64 }
  0x1e   : > { %4650 = vmatmul.mubr.msk.bf16.vlgmr.msra.gmra.mxu1 %vm365_vm1, %v5008_v9  ;;  %4700 = vmatpush3.bf16.msra.mxu0 %v1038_v7  ;;  %v5012_v15 = vld [vmem:[%s5325_s9 + $0x60] sm:$0xff]   ;;  %v5014_v17 = vld [vmem:[%s5325_s9 + $0x68] sm:$0xff]   ;;  %v5016_v19 = vld [vmem:[%s5325_s9 + $0x70] sm:$0xff]   ;;  %s3704_s19 = sshll.u32 %s192_s18, 4  ;;  %s3705_s19 = int_to_ptr.vmem [resolvable:$true] %s3704_s19 }
  0x1f   : > { %4666 = vmatpush3.bf16.msra.mxu1 %v708_v10  ;;  %4637 = vmatprep.mubr.msk.bf16.mxu0 %vm365_vm1, %v5009_v12  ;;  %v5017_v20 = vld [vmem:[%s5325_s9 + $0x38] sm:$0xff]   ;;  %v5019_v22 = vld [vmem:[%s5325_s9 + $0x40] sm:$0xff]   ;;  %v5022_v24 = vld [vmem:[%s5325_s9 + $0x10] sm:$0xff]   ;;  %s5149_s28 = scalar_lea.vmem %s3705_s19, 32  ;;  %p5156_p1 = scmp.lt.s32.totalorder %s3705_s19, %s5154_s15 }
  0x20   : > { %4653 = vmatprep.mubr.msk.bf16.mxu1 %vm365_vm1, %v5010_v13  ;;  %4943 = vmatprep.subr.msk.bf16.mxu1 %vm414_vm0, %v4051_v8  ;;  %v5018_v21 = vld [vmem:[%s5325_s9 + $0x78] sm:$0xff]   ;;  %v5020_v23 = vld [vmem:[%s5325_s9 + $0x80] sm:$0xff]   ;;  %v5023_v27 = vld [vmem:[%s5325_s9 + $0x8] sm:$0xff]   ;;  %p5150_p12 = scmp.ne.s32.totalorder %s3705_s19, %s5149_s28  ;;  %p5157_p2 = scmp.lt.s32.totalorder %s5155_s30, %s5149_s28 }
  0x21   : > { %4944 = vmatprep.subr.msk.bf16.mxu0 %vm414_vm0, %v4116_v11  ;;  %v5021_v25 = vld [vmem:[%s5325_s9] sm:$0xff]   ;;  %v5024_v26 = vld [vmem:[%s5325_s9 + $0x18] sm:$0xff]   ;;  %v5025_v29 = vld [vmem:[%s5325_s9 + $0x10] sm:$0xff]  }
  0x22   : > { %v5026_v31 = vld [vmem:[%s5325_s9 + $0x20] sm:$0xff]   ;;  %v5027_v34 = vld [vmem:[%s5325_s9 + $0x18] sm:$0xff]   ;;  %v5028_v35 = vld [vmem:[%s5325_s9 + $0x28] sm:$0xff]   ;;  %p5151_p13 = pnand %p5150_p12, %p5288_p4  ;;  %p5158_p3 = por %p5157_p2, %p5156_p1 }
  0x23   : > { %v5030_v36 = vld [vmem:[%s5325_s9 + $0x30] sm:$0xff]   ;;  %v5029_v37 = vld [vmem:[%s5325_s9 + $0x20] sm:$0xff]   ;;  %v5031_v38 = vld [vmem:[%s5325_s9 + $0x28] sm:$0xff]  }
  0x24   : > { %v5032_v39 = vld [vmem:[%s5325_s9 + $0x38] sm:$0xff]   ;;  %v5034_v40 = vld [vmem:[%s5325_s9 + $0x40] sm:$0xff]   ;;  %v5033_v41 = vld [vmem:[%s5325_s9 + $0x30] sm:$0xff]   ;;  %p5152_p0 = pneg %p5151_p13 }
  0x25   : > { %4638 = vmatmul.mubr.msk.bf16.gmra.mxu0 %vm365_vm1, %v5011_v14  ;;  %v5035_v42 = vld [vmem:[%s5325_s9 + $0x38] sm:$0xff]   ;;  %v5036_v43 = vld [vmem:[%s5325_s9 + $0x48] sm:$0xff]   ;;  %v5038_v44 = vld [vmem:[%s5325_s9 + $0x50] sm:$0xff]  }
  0x26   : > { %4654 = vmatmul.mubr.msk.bf16.gmra.mxu1 %vm365_vm1, %v5012_v15  ;;  %4641 = vmatprep.mubr.msk.bf16.mxu0 %vm365_vm1, %v5013_v16  ;;  %v5037_v45 = vld [vmem:[%s5325_s9 + $0x40] sm:$0xff]   ;;  %v5039_v46 = vld [vmem:[%s5325_s9 + $0x48] sm:$0xff]   ;;  %v5040_v47 = vld [vmem:[%s5325_s9 + $0x58] sm:$0xff]   ;;  %p5159_p5 = pnand %p5158_p3, %p5152_p0 }
  0x27   : > { %4657 = vmatprep.mubr.msk.bf16.mxu1 %vm365_vm1, %v5014_v17  ;;  %v5042_v48 = vld [vmem:[%s5325_s9 + $0x60] sm:$0xff]   ;;  %v5041_v49 = vld [vmem:[%s5325_s9 + $0x50] sm:$0xff]   ;;  %v5043_v50 = vld [vmem:[%s5325_s9 + $0x58] sm:$0xff]  }
  0x28   : > { %v5044_v51 = vld [vmem:[%s5325_s9 + $0x68] sm:$0xff]   ;;  %v5046_v52 = vld [vmem:[%s5325_s9 + $0x70] sm:$0xff]   ;;  %v5045_v53 = vld [vmem:[%s5325_s9 + $0x60] sm:$0xff]  }
  0x29   : > { %v5047_v54 = vld [vmem:[%s5325_s9 + $0x68] sm:$0xff]   ;;  %v5048_v55 = vld [vmem:[%s5325_s9 + $0x78] sm:$0xff]   ;;  %v5050_v56 = vld [vmem:[%s5325_s9 + $0x80] sm:$0xff]  }
  0x2a   : > { %v5049_v57 = vld [vmem:[%s5325_s9 + $0x70] sm:$0xff]   ;;  %v5051_v58 = vld [vmem:[%s5325_s9 + $0x78] sm:$0xff]   ;;  %v5052_v59 = vld [vmem:[%s5325_s9 + $0x88] sm:$0xff]  }
  0x2b   : > { %v5054_v60 = vld [vmem:[%s5325_s9 + $0x20] sm:$0xff]   ;;  %v5053_v61 = vld [vmem:[%s5325_s9 + $0x18] sm:$0xff]   ;;  %v5056_v62 = vld [vmem:[%s5325_s9 + $0x28] sm:$0xff]  }
  0x2c   : > { %v5055_v63 = vld [vmem:[%s5325_s9 + $0x20] sm:$0xff]   ;;  %v5057_v1 = vld [vmem:[%s5325_s9 + $0x28] sm:$0xff]   ;;  %v5058_v3 = vld [vmem:[%s5325_s9 + $0x30] sm:$0xff]  }
  0x2d   : > { %4642 = vmatmul.mubr.msk.bf16.gmra.mxu0 %vm365_vm1, %v5015_v18  ;;  %v5465_v4 = vld [vmem:[%s6244_s1 + $0xe] sm:$0x3]  ;;  %v5471_v5 = vld [vmem:[%s6244_s1 + $0x10] sm:$0x3]  ;;  %v5060_v7 = vld [vmem:[%s5325_s9 + $0x38] sm:$0xff]  }
  0x2e   : > { %4658 = vmatmul.mubr.msk.bf16.gmra.mxu1 %vm365_vm1, %v5016_v19  ;;  %4645 = vmatprep.mubr.msk.bf16.mxu0 %vm365_vm1, %v5017_v20  ;;  %v5059_v6 = vld [vmem:[%s5325_s9 + $0x30] sm:$0xff]   ;;  %v5062_v8 = vld [vmem:[%s5325_s9 + $0x40] sm:$0xff]   ;;  %v5061_v9 = vld [vmem:[%s5325_s9 + $0x38] sm:$0xff]  }
  0x2f   : > { %4661 = vmatprep.mubr.msk.bf16.mxu1 %vm365_vm1, %v5018_v21  ;;  %v5063_v10 = vld [vmem:[%s5325_s9 + $0x40] sm:$0xff]   ;;  %v5064_v11 = vld [vmem:[%s5325_s9 + $0x48] sm:$0xff]   ;;  %v5066_v12 = vld [vmem:[%s5325_s9 + $0x50] sm:$0xff]  }
  0x30   : > { %v5065_v13 = vld [vmem:[%s5325_s9 + $0x48] sm:$0xff]   ;;  %v5067_v14 = vld [vmem:[%s5325_s9 + $0x50] sm:$0xff]   ;;  %v5068_v15 = vld [vmem:[%s5325_s9 + $0x58] sm:$0xff]  }
  0x31   : > { %v5070_v16 = vld [vmem:[%s5325_s9 + $0x60] sm:$0xff]   ;;  %v5069_v17 = vld [vmem:[%s5325_s9 + $0x58] sm:$0xff]   ;;  %v5072_v19 = vld [vmem:[%s5325_s9 + $0x68] sm:$0xff]  }
  0x32   : > { %v5071_v18 = vld [vmem:[%s5325_s9 + $0x60] sm:$0xff]   ;;  %v5074_v20 = vld [vmem:[%s5325_s9 + $0x70] sm:$0xff]   ;;  %v5073_v21 = vld [vmem:[%s5325_s9 + $0x68] sm:$0xff]  }
  0x35   : > { %4646 = vmatmul.mubr.msk.bf16.gmra.mxu0 %vm365_vm1, %v5019_v22  ;;  %v5076_v22 = vld [vmem:[%s5325_s9 + $0x78] sm:$0xff]  }
  0x36   : > { %4662 = vmatmul.mubr.msk.bf16.gmra.mxu1 %vm365_vm1, %v5020_v23  ;;  %4701 = vmatprep.mubr.msk.bf16.mxu0 %vm365_vm1, %v5022_v24  ;;  %v5075_v23 = vld [vmem:[%s5325_s9 + $0x70] sm:$0xff]   ;;  %v5078_v24 = vld [vmem:[%s5325_s9 + $0x80] sm:$0xff]  }
  0x37   : > { %4667 = vmatprep.mubr.msk.bf16.mxu1 %vm365_vm1, %v5021_v25  ;;  %v5077_v25 = vld [vmem:[%s5325_s9 + $0x78] sm:$0xff]  }
  0x3d   : > { %4702 = vmatmul.mubr.msk.bf16.vlgmr.msra.gmra.mxu0 %vm365_vm1, %v5024_v26  ;;  %v5080_v26 = vld [vmem:[%s5325_s9 + $0x88] sm:$0xff]  }
  0x3e   : > { %4668 = vmatmul.mubr.msk.bf16.vlgmr.msra.gmra.mxu1 %vm365_vm1, %v5023_v27  ;;  %4768 = vmatpush3.bf16.msra.mxu0 %v1762_v28  ;;  %v5079_v27 = vld [vmem:[%s5325_s9 + $0x80] sm:$0xff]   ;;  %v5082_v28 = vld [vmem:[%s5325_s9 + $0x90] sm:$0xff]  }
  0x3f   : > { %4734 = vmatpush3.bf16.msra.mxu1 %v1400_v30  ;;  %4671 = vmatprep.mubr.msk.bf16.mxu1 %vm365_vm1, %v5025_v29  ;;  %v5081_v29 = vld [vmem:[%s5325_s9 + $0x88] sm:$0xff]   ;;  %v5084_v30 = vld [vmem:[%s5325_s9 + $0x98] sm:$0xff]  }
  0x40   : > { %4705 = vmatprep.mubr.msk.bf16.mxu0 %vm365_vm1, %v5026_v31  ;;  %4945 = vmatprep.subr.msk.bf16.mxu1 %vm414_vm0, %v5383_v32  ;;  %v5083_v31 = vld [vmem:[%s5325_s9 + $0x90] sm:$0xff]  }
  0x41   : > { %4946 = vmatprep.subr.msk.bf16.mxu0 %vm414_vm0, %v5389_v33  ;;  %v5086_v32 = vld [vmem:[%s5325_s9 + $0x30] sm:$0xff]   ;;  %v5085_v33 = vld [vmem:[%s5325_s9 + $0x28] sm:$0xff]  }
  0x45   : > { %4706 = vmatmul.mubr.msk.bf16.gmra.mxu0 %vm365_vm1, %v5028_v35  ;;  %v5087_v35 = vld [vmem:[%s5325_s9 + $0x30] sm:$0xff]  }
  0x46   : > { %4672 = vmatmul.mubr.msk.bf16.gmra.mxu1 %vm365_vm1, %v5027_v34  ;;  %4709 = vmatprep.mubr.msk.bf16.mxu0 %vm365_vm1, %v5030_v36  ;;  %v5088_v34 = vld [vmem:[%s5325_s9 + $0x38] sm:$0xff]   ;;  %v3210_v36 = vsel %vm414_vm0, %v5471_v5, 0 }
  0x47   : > { %4675 = vmatprep.mubr.msk.bf16.mxu1 %vm365_vm1, %v5029_v37  ;;  %v5089_v37 = vld [vmem:[%s5325_s9 + $0x38] sm:$0xff]  }
  0x4d   : > { %4710 = vmatmul.mubr.msk.bf16.gmra.mxu0 %vm365_vm1, %v5032_v39  ;;  %v5090_v39 = vld [vmem:[%s5325_s9 + $0x40] sm:$0xff]  }
  0x4e   : > { %4676 = vmatmul.mubr.msk.bf16.gmra.mxu1 %vm365_vm1, %v5031_v38  ;;  %4713 = vmatprep.mubr.msk.bf16.mxu0 %vm365_vm1, %v5034_v40  ;;  %v2848_v38 = vsel %vm414_vm0, %v5465_v4, 0  ;;  %v5092_v40 = vld [vmem:[%s5325_s9 + $0x48] sm:$0xff]  }
  0x4f   : > { %4679 = vmatprep.mubr.msk.bf16.mxu1 %vm365_vm1, %v5033_v41  ;;  %v5091_v41 = vld [vmem:[%s5325_s9 + $0x40] sm:$0xff]  }
  0x55   : > { %4714 = vmatmul.mubr.msk.bf16.gmra.mxu0 %vm365_vm1, %v5036_v43  ;;  %v5093_v43 = vld [vmem:[%s5325_s9 + $0x48] sm:$0xff]  }
  0x56   : > { %4680 = vmatmul.mubr.msk.bf16.gmra.mxu1 %vm365_vm1, %v5035_v42  ;;  %4717 = vmatprep.mubr.msk.bf16.mxu0 %vm365_vm1, %v5038_v44  ;;  %v5094_v42 = vld [vmem:[%s5325_s9 + $0x50] sm:$0xff]   ;;  %v5096_v44 = vld [vmem:[%s5325_s9 + $0x58] sm:$0xff]  }
  0x57   : > { %4683 = vmatprep.mubr.msk.bf16.mxu1 %vm365_vm1, %v5037_v45  ;;  %v5095_v45 = vld [vmem:[%s5325_s9 + $0x50] sm:$0xff]  }
  0x5d   : > { %4718 = vmatmul.mubr.msk.bf16.gmra.mxu0 %vm365_vm1, %v5040_v47  ;;  %v5097_v47 = vld [vmem:[%s5325_s9 + $0x58] sm:$0xff]  }
  0x5e   : > { %4684 = vmatmul.mubr.msk.bf16.gmra.mxu1 %vm365_vm1, %v5039_v46  ;;  %4721 = vmatprep.mubr.msk.bf16.mxu0 %vm365_vm1, %v5042_v48  ;;  %v5098_v46 = vld [vmem:[%s5325_s9 + $0x60] sm:$0xff]   ;;  %v5100_v48 = vld [vmem:[%s5325_s9 + $0x68] sm:$0xff]  }
  0x5f   : > { %4687 = vmatprep.mubr.msk.bf16.mxu1 %vm365_vm1, %v5041_v49  ;;  %v5099_v49 = vld [vmem:[%s5325_s9 + $0x60] sm:$0xff]  }
  0x65   : > { %4722 = vmatmul.mubr.msk.bf16.gmra.mxu0 %vm365_vm1, %v5044_v51  ;;  %v5101_v51 = vld [vmem:[%s5325_s9 + $0x68] sm:$0xff]  }
  0x66   : > { %4688 = vmatmul.mubr.msk.bf16.gmra.mxu1 %vm365_vm1, %v5043_v50  ;;  %4725 = vmatprep.mubr.msk.bf16.mxu0 %vm365_vm1, %v5046_v52  ;;  %v5102_v50 = vld [vmem:[%s5325_s9 + $0x70] sm:$0xff]   ;;  %v5104_v52 = vld [vmem:[%s5325_s9 + $0x78] sm:$0xff]  }
  0x67   : > { %4691 = vmatprep.mubr.msk.bf16.mxu1 %vm365_vm1, %v5045_v53  ;;  %v5103_v53 = vld [vmem:[%s5325_s9 + $0x70] sm:$0xff]  }
  0x6d   : > { %4726 = vmatmul.mubr.msk.bf16.gmra.mxu0 %vm365_vm1, %v5048_v55  ;;  %v5105_v55 = vld [vmem:[%s5325_s9 + $0x78] sm:$0xff]  }
  0x6e   : > { %4692 = vmatmul.mubr.msk.bf16.gmra.mxu1 %vm365_vm1, %v5047_v54  ;;  %4729 = vmatprep.mubr.msk.bf16.mxu0 %vm365_vm1, %v5050_v56  ;;  %v5106_v54 = vld [vmem:[%s5325_s9 + $0x80] sm:$0xff]  }
  0x6f   : > { %4695 = vmatprep.mubr.msk.bf16.mxu1 %vm365_vm1, %v5049_v57 }
  0x75   : > { %4730 = vmatmul.mubr.msk.bf16.gmra.mxu0 %vm365_vm1, %v5052_v59 }
  0x76   : > { %4696 = vmatmul.mubr.msk.bf16.gmra.mxu1 %vm365_vm1, %v5051_v58  ;;  %4769 = vmatprep.mubr.msk.bf16.mxu0 %vm365_vm1, %v5054_v60 }
  0x77   : > { %4735 = vmatprep.mubr.msk.bf16.mxu1 %vm365_vm1, %v5053_v61  ;;  %v5108_v61 = vld [vmem:[%s5325_s9 + $0x88] sm:$0xff]  }
  0x7d   : > { %4770 = vmatmul.mubr.msk.bf16.vlgmr.msra.gmra.mxu0 %vm365_vm1, %v5056_v62 }
  0x7e   : > { %4736 = vmatmul.mubr.msk.bf16.vlgmr.msra.gmra.mxu1 %vm365_vm1, %v5055_v63  ;;  %4836 = vmatpush3.bf16.msra.mxu0 %v2486_v0  ;;  %v5107_v63 = vld [vmem:[%s5325_s9 + $0x80] sm:$0xff]   ;;  %v5110_v0 = vld [vmem:[%s5325_s9 + $0x90] sm:$0xff]  }
  0x7f   : > { %4802 = vmatpush3.bf16.msra.mxu1 %v2124_v2  ;;  %4739 = vmatprep.mubr.msk.bf16.mxu1 %vm365_vm1, %v5057_v1  ;;  %v5109_v2 = vld [vmem:[%s5325_s9 + $0x88] sm:$0xff]  }
  0x80   : > { %4773 = vmatprep.mubr.msk.bf16.mxu0 %vm365_vm1, %v5058_v3  ;;  %4947 = vmatprep.subr.msk.bf16.mxu1 %vm414_vm0, %v5465_v4 }
  0x81   : > { %4948 = vmatprep.subr.msk.bf16.mxu0 %vm414_vm0, %v5471_v5 }
  0x85   : > { %4774 = vmatmul.mubr.msk.bf16.gmra.mxu0 %vm365_vm1, %v5060_v7 }
  0x86   : > { %4740 = vmatmul.mubr.msk.bf16.gmra.mxu1 %vm365_vm1, %v5059_v6  ;;  %4777 = vmatprep.mubr.msk.bf16.mxu0 %vm365_vm1, %v5062_v8 }
  0x87   : > { %4743 = vmatprep.mubr.msk.bf16.mxu1 %vm365_vm1, %v5061_v9  ;;  %v5112_v9 = vld [vmem:[%s5325_s9 + $0x98] sm:$0xff]  }
  0x8d   : > { %4778 = vmatmul.mubr.msk.bf16.gmra.mxu0 %vm365_vm1, %v5064_v11  ;;  %v5111_v11 = vld [vmem:[%s5325_s9 + $0x90] sm:$0xff]  }
  0x8e   : > { %4744 = vmatmul.mubr.msk.bf16.gmra.mxu1 %vm365_vm1, %v5063_v10  ;;  %4781 = vmatprep.mubr.msk.bf16.mxu0 %vm365_vm1, %v5066_v12  ;;  %v5114_v12 = vld [vmem:[%s5325_s9 + $0xa0] sm:$0xff]  }
  0x8f   : > { %4747 = vmatprep.mubr.msk.bf16.mxu1 %vm365_vm1, %v5065_v13 }
  0x95   : > { %4782 = vmatmul.mubr.msk.bf16.gmra.mxu0 %vm365_vm1, %v5068_v15 }
  0x96   : > { %4748 = vmatmul.mubr.msk.bf16.gmra.mxu1 %vm365_vm1, %v5067_v14  ;;  %4785 = vmatprep.mubr.msk.bf16.mxu0 %vm365_vm1, %v5070_v16  ;;  %v5113_v14 = vld [vmem:[%s5325_s9 + $0x98] sm:$0xff]  }
  0x97   : > { %4751 = vmatprep.mubr.msk.bf16.mxu1 %vm365_vm1, %v5069_v17 }
  0x9d   : > { %4786 = vmatmul.mubr.msk.bf16.gmra.mxu0 %vm365_vm1, %v5072_v19 }
  0x9e   : > { %4752 = vmatmul.mubr.msk.bf16.gmra.mxu1 %vm365_vm1, %v5071_v18  ;;  %4789 = vmatprep.mubr.msk.bf16.mxu0 %vm365_vm1, %v5074_v20 }
  0x9f   : > { %4755 = vmatprep.mubr.msk.bf16.mxu1 %vm365_vm1, %v5073_v21  ;;  %v5116_v21 = vld [vmem:[%s5325_s9 + $0xa8] sm:$0xff]  }
  0xa5   : > { %4790 = vmatmul.mubr.msk.bf16.gmra.mxu0 %vm365_vm1, %v5076_v22 }
  0xa6   : > { %4756 = vmatmul.mubr.msk.bf16.gmra.mxu1 %vm365_vm1, %v5075_v23  ;;  %4793 = vmatprep.mubr.msk.bf16.mxu0 %vm365_vm1, %v5078_v24  ;;  %v5115_v23 = vld [vmem:[%s5325_s9 + $0xa0] sm:$0xff]  }
  0xa7   : > { %4759 = vmatprep.mubr.msk.bf16.mxu1 %vm365_vm1, %v5077_v25  ;;  %v5118_v24 = vld [vmem:[%s5325_s9 + $0x40] sm:$0xff]  }
  0xad   : > { %4794 = vmatmul.mubr.msk.bf16.gmra.mxu0 %vm365_vm1, %v5080_v26  ;;  %v5117_v26 = vld [vmem:[%s5325_s9 + $0x38] sm:$0xff]  }
  0xae   : > { %4760 = vmatmul.mubr.msk.bf16.gmra.mxu1 %vm365_vm1, %v5079_v27  ;;  %4797 = vmatprep.mubr.msk.bf16.mxu0 %vm365_vm1, %v5082_v28 }
  0xaf   : > { %4763 = vmatprep.mubr.msk.bf16.mxu1 %vm365_vm1, %v5081_v29 }
  0xb5   : > { %4798 = vmatmul.mubr.msk.bf16.gmra.mxu0 %vm365_vm1, %v5084_v30 }
  0xb6   : > { %4764 = vmatmul.mubr.msk.bf16.gmra.mxu1 %vm365_vm1, %v5083_v31  ;;  %4837 = vmatprep.mubr.msk.bf16.mxu0 %vm365_vm1, %v5086_v32 }
  0xb7   : > { %4803 = vmatprep.mubr.msk.bf16.mxu1 %vm365_vm1, %v5085_v33  ;;  %v5120_v33 = vld [vmem:[%s5325_s9 + $0x48] sm:$0xff]  }
  0xbd   : > { %4838 = vmatmul.mubr.msk.bf16.vlgmr.msra.gmra.mxu0 %vm365_vm1, %v5088_v34 }
  0xbe   : > { %4804 = vmatmul.mubr.msk.bf16.vlgmr.msra.gmra.mxu1 %vm365_vm1, %v5087_v35  ;;  %4904 = vmatpush3.bf16.msra.mxu0 %v3210_v36  ;;  %v5119_v35 = vld [vmem:[%s5325_s9 + $0x40] sm:$0xff]   ;;  %v5122_v36 = vld [vmem:[%s5325_s9 + $0x50] sm:$0xff]  }
  0xbf   : > { %4870 = vmatpush3.bf16.msra.mxu1 %v2848_v38  ;;  %4807 = vmatprep.mubr.msk.bf16.mxu1 %vm365_vm1, %v5089_v37  ;;  %v5121_v38 = vld [vmem:[%s5325_s9 + $0x48] sm:$0xff]  }
  0xc0   : > { %4841 = vmatprep.mubr.msk.bf16.mxu0 %vm365_vm1, %v5090_v39 }
  0xc5   : > { %4842 = vmatmul.mubr.msk.bf16.gmra.mxu0 %vm365_vm1, %v5092_v40 }
  0xc6   : > { %4808 = vmatmul.mubr.msk.bf16.gmra.mxu1 %vm365_vm1, %v5091_v41  ;;  %4845 = vmatprep.mubr.msk.bf16.mxu0 %vm365_vm1, %v5094_v42 }
  0xc7   : > { %4811 = vmatprep.mubr.msk.bf16.mxu1 %vm365_vm1, %v5093_v43 }
  0xcd   : > { %4846 = vmatmul.mubr.msk.bf16.gmra.mxu0 %vm365_vm1, %v5096_v44 }
  0xce   : > { %4812 = vmatmul.mubr.msk.bf16.gmra.mxu1 %vm365_vm1, %v5095_v45  ;;  %4849 = vmatprep.mubr.msk.bf16.mxu0 %vm365_vm1, %v5098_v46 }
  0xcf   : > { %4815 = vmatprep.mubr.msk.bf16.mxu1 %vm365_vm1, %v5097_v47 }
  0xd5   : > { %4850 = vmatmul.mubr.msk.bf16.gmra.mxu0 %vm365_vm1, %v5100_v48  ;;  %v5124_v48 = vld [vmem:[%s5325_s9 + $0x58] sm:$0xff]  }
  0xd6   : > { %4816 = vmatmul.mubr.msk.bf16.gmra.mxu1 %vm365_vm1, %v5099_v49  ;;  %4853 = vmatprep.mubr.msk.bf16.mxu0 %vm365_vm1, %v5102_v50  ;;  %v5123_v50 = vld [vmem:[%s5325_s9 + $0x50] sm:$0xff]  }
  0xd7   : > { %4819 = vmatprep.mubr.msk.bf16.mxu1 %vm365_vm1, %v5101_v51  ;;  %v5126_v51 = vld [vmem:[%s5325_s9 + $0x60] sm:$0xff]  }
  0xdd   : > { %v5575_v56 = vpop.f32.mrf.mxu0  ;;  %4854 = vmatmul.mubr.msk.bf16.gmra.mxu0 %vm365_vm1, %v5104_v52 }
  0xde   : > { %v5578_v57 = vpop.f32.mrf.mxu1  ;;  %4820 = vmatmul.mubr.msk.bf16.gmra.mxu1 %vm365_vm1, %v5103_v53  ;;  %4857 = vmatprep.mubr.msk.bf16.mxu0 %vm365_vm1, %v5106_v54 }
  0xdf   : > { %v5582_v58 = vpop.f32.mrf.mxu0  ;;  %4823 = vmatprep.mubr.msk.bf16.mxu1 %vm365_vm1, %v5105_v55  ;;  %v5125_v55 = vld [vmem:[%s5325_s9 + $0x58] sm:$0xff]  }
  0xe0   : > { %v5585_v59 = vpop.f32.mrf.mxu1 }
  0xe1   : > { %v5587_v60 = vpop.f32.mrf.mxu0 }
  0xe2   : > { %v5590_v62 = vpop.f32.mrf.mxu1 }
  0xe3   : > { %v5594_v1 = vpop.f32.mrf.mxu0 }
  0xe4   : > { %v5597_v3 = vpop.f32.mrf.mxu1 }
  0xe5   : > { %v5599_v4 = vpop.f32.mrf.mxu0  ;;  %4858 = vmatmul.mubr.msk.bf16.gmra.mxu0 %vm365_vm1, %v5108_v61 }
  0xe6   : > { %v5602_v5 = vpop.f32.mrf.mxu1  ;;  %4824 = vmatmul.mubr.msk.bf16.gmra.mxu1 %vm365_vm1, %v5107_v63  ;;  %4861 = vmatprep.mubr.msk.bf16.mxu0 %vm365_vm1, %v5110_v0 }
  0xe7   : > { %v5606_v6 = vpop.f32.mrf.mxu0  ;;  %4827 = vmatprep.mubr.msk.bf16.mxu1 %vm365_vm1, %v5109_v2 }
  0xe8   : > { %v5609_v7 = vpop.f32.mrf.mxu1 }
  0xe9   : > { %v5611_v8 = vpop.f32.mrf.mxu0 }
  0xea   : > { %v5614_v10 = vpop.f32.mrf.mxu1 }
  0xeb   : > { %v5618_v13 = vpop.f32.mrf.mxu0 }
  0xec   : > { %v5621_v15 = vpop.f32.mrf.mxu1 }
  0xed   : > { %v5623_v16 = vpop.f32.mrf.mxu0  ;;  %4862 = vmatmul.mubr.msk.bf16.gmra.mxu0 %vm365_vm1, %v5112_v9 }
  0xee   : > { %v5626_v17 = vpop.f32.mrf.mxu1  ;;  %4828 = vmatmul.mubr.msk.bf16.gmra.mxu1 %vm365_vm1, %v5111_v11  ;;  %4865 = vmatprep.mubr.msk.bf16.mxu0 %vm365_vm1, %v5114_v12 }
  0xef   : > { %v5630_v18 = vpop.f32.mrf.mxu0  ;;  %4831 = vmatprep.mubr.msk.bf16.mxu1 %vm365_vm1, %v5113_v14 }
  0xf0   : > { %v5633_v19 = vpop.f32.mrf.mxu1 }
  0xf1   : > { %v5635_v20 = vpop.f32.mrf.mxu0 }
  0xf2   : > { %v5638_v22 = vpop.f32.mrf.mxu1 }
  0xf3   : > { %v5642_v25 = vpop.f32.mrf.mxu0 }
  0xf4   : > { %v5645_v27 = vpop.f32.mrf.mxu1 }
  0xf5   : > { %v5647_v28 = vpop.f32.mrf.mxu0  ;;  %4866 = vmatmul.mubr.msk.bf16.gmra.mxu0 %vm365_vm1, %v5116_v21  ;;  %v5128_v21 = vld [vmem:[%s5325_s9 + $0x68] sm:$0xff]  }
  0xf6   : > { %v5650_v29 = vpop.f32.mrf.mxu1  ;;  %4832 = vmatmul.mubr.msk.bf16.gmra.mxu1 %vm365_vm1, %v5115_v23  ;;  %4905 = vmatprep.mubr.msk.bf16.mxu0 %vm365_vm1, %v5118_v24  ;;  %v5127_v24 = vld [vmem:[%s5325_s9 + $0x60] sm:$0xff]  }
  0xf7   : > { %v5654_v30 = vpop.f32.mrf.mxu0  ;;  %4871 = vmatprep.mubr.msk.bf16.mxu1 %vm365_vm1, %v5117_v26  ;;  %v5130_v26 = vld [vmem:[%s5325_s9 + $0x70] sm:$0xff]  }
  0xf8   : > { %v5657_v31 = vpop.f32.mrf.mxu1 }
  0xf9   : > { %v5659_v32 = vpop.f32.mrf.mxu0 }
  0xfa   : > { %v5662_v34 = vpop.f32.mrf.mxu1 }
  0xfb   : > { %v5666_v37 = vpop.f32.mrf.mxu0 }
  0xfc   : > { %v5669_v39 = vpop.f32.mrf.mxu1 }
  0xfd   : > { %v4703_v40 = vpop.f32.mrf.mxu0  ;;  %4906 = vmatmul.mubr.msk.bf16.vlgmr.msra.gmra.mxu0 %vm365_vm1, %v5120_v33 }
  0xfe   : > { %v4669_v41 = vpop.f32.mrf.mxu1  ;;  %4872 = vmatmul.mubr.msk.bf16.vlgmr.msra.gmra.mxu1 %vm365_vm1, %v5119_v35  ;;  %4909 = vmatprep.mubr.msk.bf16.mxu0 %vm365_vm1, %v5122_v36 }
  0xff   : > { %v753_v42 = vadd.f32 %v4669_v41, %v5575_v56  ;;  %v1074_v43 = vpop.f32.mrf.mxu0  ;;  %4875 = vmatprep.mubr.msk.bf16.mxu1 %vm365_vm1, %v5121_v38  ;;  %v5129_v38 = vld [vmem:[%s5325_s9 + $0x68] sm:$0xff]  }
 0x100   : > { %v744_v44 = vpop.f32.mrf.mxu1 }
 0x101   : > { %v5676_v45 = vadd.f32 %v4703_v40, %v753_v42  ;;  %v745_v46 = vadd.f32 %v744_v44, %v5582_v58  ;;  %v4704_v47 = vpop.f32.mrf.mxu0 }
 0x102   : > { %v4670_v49 = vpop.f32.mrf.mxu1 }
 0x103   : > { %v5682_v52 = vadd.f32 %v1074_v43, %v745_v46  ;;  %v756_v53 = vadd.f32 %v4670_v49, %v5587_v60  ;;  %v1077_v54 = vpop.f32.mrf.mxu0  ;;  %v5132_v49 = vld [vmem:[%s5325_s9 + $0x78] sm:$0xff]  }
 0x104   : > { %v747_v56 = vpop.f32.mrf.mxu1 }
 0x105   : > { %v5686_v61 = vadd.f32 %v4704_v47, %v756_v53  ;;  %v748_v63 = vadd.f32 %v747_v56, %v5594_v1  ;;  %v4707_v0 = vpop.f32.mrf.mxu0  ;;  %4910 = vmatmul.mubr.msk.bf16.gmra.mxu0 %vm365_vm1, %v5124_v48  ;;  %v5134_v53 = vld [vmem:[%s5325_s9 + $0x80] sm:$0xff]  }
 0x106   : > { %v4673_v58 = vpop.f32.mrf.mxu1  ;;  %4876 = vmatmul.mubr.msk.bf16.gmra.mxu1 %vm365_vm1, %v5123_v50  ;;  %4913 = vmatprep.mubr.msk.bf16.mxu0 %vm365_vm1, %v5126_v51  ;;  %v5131_v51 = vld [vmem:[%s5325_s9 + $0x70] sm:$0xff]  }
 0x107   : > { %v5692_v60 = vadd.f32 %v1077_v54, %v748_v63  ;;  %v769_v2 = vadd.f32 %v4673_v58, %v5599_v4  ;;  %v1090_v9 = vpop.f32.mrf.mxu0  ;;  %4879 = vmatprep.mubr.msk.bf16.mxu1 %vm365_vm1, %v5125_v55  ;;  %v5133_v63 = vld [vmem:[%s5325_s9 + $0x78] sm:$0xff]  }
 0x108   : > { %v760_v11 = vpop.f32.mrf.mxu1 }
 0x109   : > { %v5696_v1 = vadd.f32 %v4707_v0, %v769_v2  ;;  %v761_v12 = vadd.f32 %v760_v11, %v5606_v6  ;;  %v4708_v14 = vpop.f32.mrf.mxu0 }
 0x10a   : > { %v4674_v23 = vpop.f32.mrf.mxu1 }
 0x10b   : > { %v5702_v33 = vadd.f32 %v1090_v9, %v761_v12  ;;  %v772_v35 = vadd.f32 %v4674_v23, %v5611_v8  ;;  %v1093_v36 = vpop.f32.mrf.mxu0  ;;  %v5136_v23 = vld [vmem:[%s5325_s9 + $0x88] sm:$0xff]  }
 0x10c   : > { %v763_v4 = vpop.f32.mrf.mxu1 }
 0x10d   : > { %v5706_v40 = vadd.f32 %v4708_v14, %v772_v35  ;;  %v764_v41 = vadd.f32 %v763_v4, %v5618_v13  ;;  %v4711_v42 = vpop.f32.mrf.mxu0  ;;  %4914 = vmatmul.mubr.msk.bf16.gmra.mxu0 %vm365_vm1, %v5128_v21  ;;  %v5138_v35 = vld [vmem:[%s5325_s9 + $0x90] sm:$0xff]  }
 0x10e   : > { %v4677_v6 = vpop.f32.mrf.mxu1  ;;  %4880 = vmatmul.mubr.msk.bf16.gmra.mxu1 %vm365_vm1, %v5127_v24  ;;  %4917 = vmatprep.mubr.msk.bf16.mxu0 %vm365_vm1, %v5130_v26  ;;  %v5135_v26 = vld [vmem:[%s5325_s9 + $0x80] sm:$0xff]  }
 0x10f   : > { %v5712_v8 = vadd.f32 %v1093_v36, %v764_v41  ;;  %v785_v43 = vadd.f32 %v4677_v6, %v5623_v16  ;;  %v1106_v44 = vpop.f32.mrf.mxu0  ;;  %4883 = vmatprep.mubr.msk.bf16.mxu1 %vm365_vm1, %v5129_v38  ;;  %v5137_v41 = vld [vmem:[%s5325_s9 + $0x88] sm:$0xff]  }
 0x110   : > { %v776_v46 = vpop.f32.mrf.mxu1 }
 0x111   : > { %v5716_v13 = vadd.f32 %v4711_v42, %v785_v43  ;;  %v777_v47 = vadd.f32 %v776_v46, %v5630_v18  ;;  %v4712_v48 = vpop.f32.mrf.mxu0 }
 0x112   : > { %v4678_v50 = vpop.f32.mrf.mxu1 }
 0x113   : > { %v5722_v54 = vadd.f32 %v1106_v44, %v777_v47  ;;  %v788_v55 = vadd.f32 %v4678_v50, %v5635_v20  ;;  %v1109_v56 = vpop.f32.mrf.mxu0  ;;  %v5140_v50 = vld [vmem:[%s5325_s9 + $0x98] sm:$0xff]  }
 0x114   : > { %v779_v16 = vpop.f32.mrf.mxu1 }
 0x115   : > { %v5726_v0 = vadd.f32 %v4712_v48, %v788_v55  ;;  %v780_v58 = vadd.f32 %v779_v16, %v5642_v25  ;;  %v4715_v2 = vpop.f32.mrf.mxu0  ;;  %4918 = vmatmul.mubr.msk.bf16.gmra.mxu0 %vm365_vm1, %v5132_v49  ;;  %v5142_v55 = vld [vmem:[%s5325_s9 + $0xa0] sm:$0xff]  }
 0x116   : > { %v4681_v18 = vpop.f32.mrf.mxu1  ;;  %4884 = vmatmul.mubr.msk.bf16.gmra.mxu1 %vm365_vm1, %v5131_v51  ;;  %4921 = vmatprep.mubr.msk.bf16.mxu0 %vm365_vm1, %v5134_v53  ;;  %v5139_v53 = vld [vmem:[%s5325_s9 + $0x90] sm:$0xff]  }
 0x117   : > { %v5732_v20 = vadd.f32 %v1109_v56, %v780_v58  ;;  %v801_v9 = vadd.f32 %v4681_v18, %v5647_v28  ;;  %v1122_v11 = vpop.f32.mrf.mxu0  ;;  %4887 = vmatprep.mubr.msk.bf16.mxu1 %vm365_vm1, %v5133_v63  ;;  %v5141_v58 = vld [vmem:[%s5325_s9 + $0x98] sm:$0xff]  }
 0x118   : > { %v792_v12 = vpop.f32.mrf.mxu1 }
 0x119   : > { %v5736_v25 = vadd.f32 %v4715_v2, %v801_v9  ;;  %v793_v14 = vadd.f32 %v792_v12, %v5654_v30  ;;  %v4716_v21 = vpop.f32.mrf.mxu0 }
 0x11a   : > { %v4682_v24 = vpop.f32.mrf.mxu1 }
 0x11b   : > { %v5742_v36 = vadd.f32 %v1122_v11, %v793_v14  ;;  %v804_v38 = vadd.f32 %v4682_v24, %v5659_v32  ;;  %v1125_v4 = vpop.f32.mrf.mxu0  ;;  %v5144_v24 = vld [vmem:[%s5325_s9 + $0xa8] sm:$0xff]  }
 0x11c   : > { %v795_v28 = vpop.f32.mrf.mxu1 }
 0x11d   : > { %v5746_v42 = vadd.f32 %v4716_v21, %v804_v38  ;;  %v796_v6 = vadd.f32 %v795_v28, %v5666_v37  ;;  %v4719_v43 = vpop.f32.mrf.mxu0  ;;  %4922 = vmatmul.mubr.msk.bf16.gmra.mxu0 %vm365_vm1, %v5136_v23  ;;  %v5146_v38 = vld [vmem:[%s5325_s9 + $0xb0] sm:$0xff]  }
 0x11e   : > { %v4685_v30 = vpop.f32.mrf.mxu1  ;;  %4888 = vmatmul.mubr.msk.bf16.gmra.mxu1 %vm365_vm1, %v5135_v26  ;;  %4925 = vmatprep.mubr.msk.bf16.mxu0 %vm365_vm1, %v5138_v35  ;;  %v5143_v35 = vld [vmem:[%s5325_s9 + $0xa0] sm:$0xff]  }
 0x11f   : > { %v5752_v32 = vadd.f32 %v1125_v4, %v796_v6  ;;  %v817_v44 = vadd.f32 %v4685_v30, %v5578_v57  ;;  %v1138_v46 = vpop.f32.mrf.mxu0  ;;  %4891 = vmatprep.mubr.msk.bf16.mxu1 %vm365_vm1, %v5137_v41  ;;  %v5145_v6 = vld [vmem:[%s5325_s9 + $0xa8] sm:$0xff]  }
 0x120   : > { %v808_v47 = vpop.f32.mrf.mxu1 }
 0x121   : > { %v5756_v37 = vadd.f32 %v4719_v43, %v817_v44  ;;  %v809_v48 = vadd.f32 %v808_v47, %v5585_v59  ;;  %v4720_v49 = vpop.f32.mrf.mxu0 }
 0x122   : > { %v4686_v51 = vpop.f32.mrf.mxu1 }
 0x123   : > { %v5762_v56 = vadd.f32 %v1138_v46, %v809_v48  ;;  %v820_v63 = vadd.f32 %v4686_v51, %v5590_v62  ;;  %v1141_v16 = vpop.f32.mrf.mxu0  ;;  %v5148_v51 = vld [vmem:[%s5325_s9 + $0xb8] sm:$0xff]  }
 0x124   : > { %v811_v57 = vpop.f32.mrf.mxu1 }
 0x125   : > { %v5766_v2 = vadd.f32 %v4720_v49, %v820_v63  ;;  %v812_v18 = vadd.f32 %v811_v57, %v5597_v3  ;;  %v4723_v9 = vpop.f32.mrf.mxu0  ;;  %4926 = vmatmul.mubr.msk.bf16.gmra.mxu0 %vm365_vm1, %v5140_v50 }
 0x126   : > { %v4689_v59 = vpop.f32.mrf.mxu1  ;;  %4892 = vmatmul.mubr.msk.bf16.gmra.mxu1 %vm365_vm1, %v5139_v53  ;;  %4929 = vmatprep.mubr.msk.bf16.mxu0 %vm365_vm1, %v5142_v55  ;;  %v5147_v55 = vld [vmem:[%s5325_s9 + $0xb0] sm:$0xff]   ;;  %s6055_s9 = scalar_lea.vmem %s6245_s2, %s4445_s6 }
 0x127   : > { %v5772_v62 = vadd.f32 %v1141_v16, %v812_v18  ;;  %v833_v11 = vadd.f32 %v4689_v59, %v5602_v5  ;;  %v1154_v12 = vpop.f32.mrf.mxu0  ;;  %4895 = vmatprep.mubr.msk.bf16.mxu1 %vm365_vm1, %v5141_v58 }
 0x128   : > { %v824_v14 = vpop.f32.mrf.mxu1 }
 0x129   : > { %v5776_v3 = vadd.f32 %v4723_v9, %v833_v11  ;;  %v825_v21 = vadd.f32 %v824_v14, %v5609_v7  ;;  %v4724_v23 = vpop.f32.mrf.mxu0 }
 0x12a   : > { %v4690_v26 = vpop.f32.mrf.mxu1 }
 0x12b   : > { %v5782_v4 = vadd.f32 %v1154_v12, %v825_v21  ;;  %v836_v41 = vadd.f32 %v4690_v26, %v5614_v10  ;;  %v1157_v28 = vpop.f32.mrf.mxu0 }
 0x12c   : > { %v827_v5 = vpop.f32.mrf.mxu1 }
 0x12d   : > { %v5786_v43 = vadd.f32 %v4724_v23, %v836_v41  ;;  %v828_v30 = vadd.f32 %v827_v5, %v5621_v15  ;;  %v4727_v44 = vpop.f32.mrf.mxu0  ;;  %4930 = vmatmul.mubr.msk.bf16.gmra.mxu0 %vm365_vm1, %v5144_v24 }
 0x12e   : > { %v4693_v7 = vpop.f32.mrf.mxu1  ;;  %4896 = vmatmul.mubr.msk.bf16.gmra.mxu1 %vm365_vm1, %v5143_v35  ;;  %4933 = vmatprep.mubr.msk.bf16.mxu0 %vm365_vm1, %v5146_v38 }
 0x12f   : > { %v5792_v46 = vadd.f32 %v1157_v28, %v828_v30  ;;  %v849_v10 = vadd.f32 %v4693_v7, %v5626_v17  ;;  %v1170_v47 = vpop.f32.mrf.mxu0  ;;  %4899 = vmatprep.mubr.msk.bf16.mxu1 %vm365_vm1, %v5145_v6 }
 0x130   : > { %v840_v48 = vpop.f32.mrf.mxu1 }
 0x131   : > { %v5796_v49 = vadd.f32 %v4727_v44, %v849_v10  ;;  %v841_v15 = vadd.f32 %v840_v48, %v5633_v19  ;;  %v4728_v50 = vpop.f32.mrf.mxu0 }
 0x132   : > { %v4694_v53 = vpop.f32.mrf.mxu1 }
 0x133   : > { %v5801_v63 = vadd.f32 %v1170_v47, %v841_v15  ;;  %v852_v16 = vadd.f32 %v4694_v53, %v5638_v22  ;;  %v1173_v58 = vpop.f32.mrf.mxu0 }
 0x134   : > { %v843_v57 = vpop.f32.mrf.mxu1 }
 0x135   : > { %v5804_v18 = vadd.f32 %v4728_v50, %v852_v16  ;;  %v844_v17 = vadd.f32 %v843_v57, %v5645_v27  ;;  %v4731_v9 = vpop.f32.mrf.mxu0  ;;  %4934 = vmatmul.mubr.msk.bf16.gmra.mxu0 %vm365_vm1, %v5148_v51 }
 0x136   : > { %v4697_v59 = vpop.f32.mrf.mxu1  ;;  %4900 = vmatmul.mubr.msk.bf16.gmra.mxu1 %vm365_vm1, %v5147_v55 }
 0x137   : > { %v5809_v19 = vadd.f32 %v1173_v58, %v844_v17  ;;  %v865_v11 = vadd.f32 %v4697_v59, %v5650_v29  ;;  %v1186_v12 = vpop.f32.mrf.mxu0 }
 0x138   : > { %v856_v14 = vpop.f32.mrf.mxu1 }
 0x139   : > { %v5812_v21 = vadd.f32 %v4731_v9, %v865_v11  ;;  %v857_v22 = vadd.f32 %v856_v14, %v5657_v31  ;;  %v4732_v23 = vpop.f32.mrf.mxu0 }
 0x13a   : > { %v4698_v24 = vpop.f32.mrf.mxu1 }
 0x13b   : > { %v5815_v26 = vadd.f32 %v1186_v12, %v857_v22  ;;  %v868_v27 = vadd.f32 %v4698_v24, %v5662_v34  ;;  %v1189_v35 = vpop.f32.mrf.mxu0 }
 0x13c   : > { %v859_v38 = vpop.f32.mrf.mxu1 }
 0x13d   : > { %v5818_v41 = vadd.f32 %v4732_v23, %v868_v27  ;;  %v860_v28 = vadd.f32 %v859_v38, %v5669_v39  ;;  %v4771_v6 = vpop.f32.mrf.mxu0 }
 0x13e   : > { %v4737_v29 = vpop.f32.mrf.mxu1 }
 0x13f   : > { %v5821_v5 = vadd.f32 %v1189_v35, %v860_v28  ;;  %v1565_v30 = vadd.f32 %v4737_v29, %v5676_v45  ;;  %v1798_v44 = vpop.f32.mrf.mxu0 }
 0x140   : > { %v1436_v31 = vpop.f32.mrf.mxu1 }
 0x141   : > { %v5824_v7 = vadd.f32 %v4771_v6, %v1565_v30  ;;  %v1563_v10 = vadd.f32 %v1436_v31, %v5682_v52  ;;  %v4772_v47 = vpop.f32.mrf.mxu0 }
 0x142   : > { %v4738_v34 = vpop.f32.mrf.mxu1 }
 0x143   : > { %v5827_v48 = vadd.f32 %v1798_v44, %v1563_v10  ;;  %v1566_v15 = vadd.f32 %v4738_v34, %v5686_v61  ;;  %v1801_v50 = vpop.f32.mrf.mxu0 }
 0x144   : > { %v1439_v39 = vpop.f32.mrf.mxu1 }
 0x145   : > { %v5830_v51 = vadd.f32 %v4772_v47, %v1566_v15  ;;  %v1564_v53 = vadd.f32 %v1439_v39, %v5692_v60  ;;  %v4775_v55 = vpop.f32.mrf.mxu0 }
 0x146   : > { %v4741_v45 = vpop.f32.mrf.mxu1 }
 0x147   : > { %v5833_v16 = vadd.f32 %v1801_v50, %v1564_v53  ;;  %v1569_v58 = vadd.f32 %v4741_v45, %v5696_v1  ;;  %v1814_v57 = vpop.f32.mrf.mxu0 }
 0x148   : > { %v1452_v52 = vpop.f32.mrf.mxu1 }
 0x149   : > { %v5836_v17 = vadd.f32 %v4775_v55, %v1569_v58  ;;  %v1567_v9 = vadd.f32 %v1452_v52, %v5702_v33  ;;  %v4776_v59 = vpop.f32.mrf.mxu0 }
 0x14a   : > { %v4742_v61 = vpop.f32.mrf.mxu1 }
 0x14b   : > { %v5839_v11 = vadd.f32 %v1814_v57, %v1567_v9  ;;  %v1570_v12 = vadd.f32 %v4742_v61, %v5706_v40  ;;  %v1817_v14 = vpop.f32.mrf.mxu0 }
 0x14c   : > { %v1455_v60 = vpop.f32.mrf.mxu1 }
 0x14d   : > { %v5842_v22 = vadd.f32 %v4776_v59, %v1570_v12  ;;  %v1568_v23 = vadd.f32 %v1455_v60, %v5712_v8  ;;  %v4779_v24 = vpop.f32.mrf.mxu0 }
 0x14e   : > { %v4745_v1 = vpop.f32.mrf.mxu1 }
 0x14f   : > { %v5845_v27 = vadd.f32 %v1817_v14, %v1568_v23  ;;  %v1573_v35 = vadd.f32 %v4745_v1, %v5716_v13  ;;  %v1830_v38 = vpop.f32.mrf.mxu0 }
 0x150   : > { %v1468_v33 = vpop.f32.mrf.mxu1 }
 0x151   : > { %v5848_v28 = vadd.f32 %v4779_v24, %v1573_v35  ;;  %v1571_v6 = vadd.f32 %v1468_v33, %v5722_v54  ;;  %v4780_v29 = vpop.f32.mrf.mxu0 }
 0x152   : > { %v4746_v40 = vpop.f32.mrf.mxu1 }
 0x153   : > { %v5851_v30 = vadd.f32 %v1830_v38, %v1571_v6  ;;  %v1574_v44 = vadd.f32 %v4746_v40, %v5726_v0  ;;  %v1833_v31 = vpop.f32.mrf.mxu0 }
 0x154   : > { %v1471_v8 = vpop.f32.mrf.mxu1 }
 0x155   : > { %v5854_v10 = vadd.f32 %v4780_v29, %v1574_v44  ;;  %v1572_v47 = vadd.f32 %v1471_v8, %v5732_v20  ;;  %v4783_v34 = vpop.f32.mrf.mxu0 }
 0x156   : > { %v4749_v13 = vpop.f32.mrf.mxu1 }
 0x157   : > { %v5857_v15 = vadd.f32 %v1833_v31, %v1572_v47  ;;  %v1577_v50 = vadd.f32 %v4749_v13, %v5736_v25  ;;  %v1846_v39 = vpop.f32.mrf.mxu0 }
 0x158   : > { %v1484_v54 = vpop.f32.mrf.mxu1 }
 0x159   : > { %v5860_v53 = vadd.f32 %v4783_v34, %v1577_v50  ;;  %v1575_v55 = vadd.f32 %v1484_v54, %v5742_v36  ;;  %v4784_v45 = vpop.f32.mrf.mxu0 }
 0x15a   : > { %v4750_v0 = vpop.f32.mrf.mxu1 }
 0x15b   : > { %v5863_v58 = vadd.f32 %v1846_v39, %v1575_v55  ;;  %v1578_v57 = vadd.f32 %v4750_v0, %v5746_v42  ;;  %v1849_v52 = vpop.f32.mrf.mxu0 }
 0x15c   : > { %v1487_v20 = vpop.f32.mrf.mxu1 }
 0x15d   : > { %v5866_v9 = vadd.f32 %v4784_v45, %v1578_v57  ;;  %v1576_v59 = vadd.f32 %v1487_v20, %v5752_v32  ;;  %v4787_v61 = vpop.f32.mrf.mxu0 }
 0x15e   : > { %v4753_v25 = vpop.f32.mrf.mxu1 }
 0x15f   : > { %v5869_v12 = vadd.f32 %v1849_v52, %v1576_v59  ;;  %v1581_v14 = vadd.f32 %v4753_v25, %v5756_v37  ;;  %v1862_v60 = vpop.f32.mrf.mxu0 }
 0x160   : > { %v1500_v36 = vpop.f32.mrf.mxu1 }
 0x161   : > { %v5872_v23 = vadd.f32 %v4787_v61, %v1581_v14  ;;  %v1579_v24 = vadd.f32 %v1500_v36, %v5762_v56  ;;  %v4788_v1 = vpop.f32.mrf.mxu0 }
 0x162   : > { %v4754_v42 = vpop.f32.mrf.mxu1 }
 0x163   : > { %v5875_v35 = vadd.f32 %v1862_v60, %v1579_v24  ;;  %v1582_v38 = vadd.f32 %v4754_v42, %v5766_v2  ;;  %v1865_v33 = vpop.f32.mrf.mxu0 }
 0x164   : > { %v1503_v32 = vpop.f32.mrf.mxu1 }
 0x165   : > { %v5878_v6 = vadd.f32 %v4788_v1, %v1582_v38  ;;  %v1580_v29 = vadd.f32 %v1503_v32, %v5772_v62  ;;  %v4791_v40 = vpop.f32.mrf.mxu0 }
 0x166   : > { %v4757_v37 = vpop.f32.mrf.mxu1 }
 0x167   : > { %v5881_v44 = vadd.f32 %v1865_v33, %v1580_v29  ;;  %v1585_v31 = vadd.f32 %v4757_v37, %v5776_v3  ;;  %v1878_v8 = vpop.f32.mrf.mxu0 }
 0x168   : > { %v1516_v56 = vpop.f32.mrf.mxu1 }
 0x169   : > { %6249 = vst [vmem:[#allocation5_spill] sm:$0xff] %v5881_v44  ;;  %v5884_v47 = vadd.f32 %v4791_v40, %v1585_v31  ;;  %v1583_v34 = vadd.f32 %v1516_v56, %v5782_v4  ;;  %v4792_v13 = vpop.f32.mrf.mxu0 }
 0x16a   : > { %v4758_v2 = vpop.f32.mrf.mxu1 }
 0x16b   : > { %6250 = vst [vmem:[#allocation6_spill] sm:$0xff] %v5884_v47  ;;  %v5887_v50 = vadd.f32 %v1878_v8, %v1583_v34  ;;  %v1586_v39 = vadd.f32 %v4758_v2, %v5786_v43  ;;  %v1881_v54 = vpop.f32.mrf.mxu0 }
 0x16c   : > { %v1519_v62 = vpop.f32.mrf.mxu1 }
 0x16d   : > { %6251 = vst [vmem:[#allocation7_spill] sm:$0xff] %v5887_v50  ;;  %v5890_v55 = vadd.f32 %v4792_v13, %v1586_v39  ;;  %v1584_v45 = vadd.f32 %v1519_v62, %v5792_v46  ;;  %v4795_v0 = vpop.f32.mrf.mxu0 }
 0x16e   : > { %v4761_v3 = vpop.f32.mrf.mxu1 }
 0x16f   : > { %6252 = vst [vmem:[#allocation8_spill] sm:$0xff] %v5890_v55  ;;  %v5893_v57 = vadd.f32 %v1881_v54, %v1584_v45  ;;  %v1589_v52 = vadd.f32 %v4761_v3, %v5796_v49  ;;  %v1894_v20 = vpop.f32.mrf.mxu0 }
 0x170   : > { %v1532_v4 = vpop.f32.mrf.mxu1 }
 0x171   : > { %6253 = vst [vmem:[#allocation9_spill] sm:$0xff] %v5893_v57  ;;  %v5896_v59 = vadd.f32 %v4795_v0, %v1589_v52  ;;  %v1587_v61 = vadd.f32 %v1532_v4, %v5801_v63  ;;  %v4796_v25 = vpop.f32.mrf.mxu0 }
 0x172   : > { %v4762_v43 = vpop.f32.mrf.mxu1 }
 0x173   : > { %6254 = vst [vmem:[#allocation10_spill] sm:$0xff] %v5896_v59  ;;  %v5899_v14 = vadd.f32 %v1894_v20, %v1587_v61  ;;  %v1590_v60 = vadd.f32 %v4762_v43, %v5804_v18  ;;  %v1897_v36 = vpop.f32.mrf.mxu0 }
 0x174   : > { %v1535_v46 = vpop.f32.mrf.mxu1 }
 0x175   : > { %6255 = vst [vmem:[#allocation11_spill] sm:$0xff] %v5899_v14  ;;  %v5902_v24 = vadd.f32 %v4796_v25, %v1590_v60  ;;  %v1588_v1 = vadd.f32 %v1535_v46, %v5809_v19  ;;  %v4799_v42 = vpop.f32.mrf.mxu0 }
 0x176   : > { %v4765_v49 = vpop.f32.mrf.mxu1 }
 0x177   : > { %6256 = vst [vmem:[#allocation12_spill] sm:$0xff] %v5902_v24  ;;  %v5905_v38 = vadd.f32 %v1897_v36, %v1588_v1  ;;  %v1593_v33 = vadd.f32 %v4765_v49, %v5812_v21  ;;  %v1910_v32 = vpop.f32.mrf.mxu0 }
 0x178   : > { %v1548_v63 = vpop.f32.mrf.mxu1 }
 0x179   : > { %6257 = vst [vmem:[#allocation13_spill] sm:$0xff] %v5905_v38  ;;  %v5908_v29 = vadd.f32 %v4799_v42, %v1593_v33  ;;  %v1591_v40 = vadd.f32 %v1548_v63, %v5815_v26  ;;  %v4800_v37 = vpop.f32.mrf.mxu0 }
 0x17a   : > { %v4766_v18 = vpop.f32.mrf.mxu1 }
 0x17b   : > { %6258 = vst [vmem:[#allocation14_spill] sm:$0xff] %v5908_v29  ;;  %v5911_v31 = vadd.f32 %v1910_v32, %v1591_v40  ;;  %v1594_v8 = vadd.f32 %v4766_v18, %v5818_v41  ;;  %v1913_v56 = vpop.f32.mrf.mxu0 }
 0x17c   : > { %v1551_v19 = vpop.f32.mrf.mxu1 }
 0x17d   : > { %6259 = vst [vmem:[#allocation15_spill] sm:$0xff] %v5911_v31  ;;  %v5914_v34 = vadd.f32 %v4800_v37, %v1594_v8  ;;  %v1592_v13 = vadd.f32 %v1551_v19, %v5821_v5  ;;  %v5917_v2 = vpop.f32.mrf.mxu0 }
 0x17e   : > { %v4805_v21 = vpop.f32.mrf.mxu1 }
 0x17f   : > { %6260 = vst [vmem:[#allocation16_spill] sm:$0xff] %v5914_v34  ;;  %v5919_v39 = vadd.f32 %v1913_v56, %v1592_v13  ;;  %v5921_v54 = vpop.f32.mrf.mxu0 }
 0x180   : > { %v2160_v26 = vpop.f32.mrf.mxu1 }
 0x181   : > { %6261 = vst [vmem:[#allocation17_spill] sm:$0xff] %v5919_v39  ;;  %v5923_v62 = vpop.f32.mrf.mxu0 }
 0x182   : > { %v4806_v45 = vpop.f32.mrf.mxu1 }
 0x183   : > { %v5925_v0 = vpop.f32.mrf.mxu0 }
 0x184   : > { %v5927_v41 = vpop.f32.mrf.mxu1 }
 0x185   : > { %v5929_v3 = vpop.f32.mrf.mxu0 }
 0x186   : > { %v5931_v52 = vpop.f32.mrf.mxu1 }
 0x187   : > { %v5933_v5 = vpop.f32.mrf.mxu0 }
 0x188   : > { %v5935_v20 = vpop.f32.mrf.mxu1 }
 0x189   : > { %v5937_v4 = vpop.f32.mrf.mxu0 }
 0x18a   : > { %v5939_v61 = vpop.f32.mrf.mxu1 }
 0x18b   : > { %v5941_v25 = vpop.f32.mrf.mxu0 }
 0x18c   : > { %v5943_v43 = vpop.f32.mrf.mxu1 }
 0x18d   : > { %v5945_v60 = vpop.f32.mrf.mxu0 }
 0x18e   : > { %v5947_v36 = vpop.f32.mrf.mxu1 }
 0x18f   : > { %v5949_v46 = vpop.f32.mrf.mxu0 }
 0x190   : > { %v5951_v1 = vpop.f32.mrf.mxu1 }
 0x191   : > { %v5953_v42 = vpop.f32.mrf.mxu0 }
 0x192   : > { %v5955_v49 = vpop.f32.mrf.mxu1 }
 0x193   : > { %v5957_v33 = vpop.f32.mrf.mxu0 }
 0x194   : > { %v5959_v32 = vpop.f32.mrf.mxu1 }
 0x195   : > { %v5961_v63 = vpop.f32.mrf.mxu0 }
 0x196   : > { %v5963_v40 = vpop.f32.mrf.mxu1 }
 0x197   : > { %v5965_v37 = vpop.f32.mrf.mxu0 }
 0x198   : > { %v5967_v18 = vpop.f32.mrf.mxu1 }
 0x199   : > { %v5969_v8 = vpop.f32.mrf.mxu0 }
 0x19a   : > { %v5971_v56 = vpop.f32.mrf.mxu1 }
 0x19b   : > { %v5973_v19 = vpop.f32.mrf.mxu0 }
 0x19c   : > { %6262 = vst [vmem:[#allocation18_spill] sm:$0xff] %v5973_v19  ;;  %v5975_v13 = vpop.f32.mrf.mxu1 }
 0x19d   : > { %v5977_v39 = vpop.f32.mrf.mxu0 }
 0x19e   : > { %6263 = vst [vmem:[#allocation19_spill] sm:$0xff] %v5977_v39  ;;  %v5979_v34 = vpop.f32.mrf.mxu1 }
 0x19f   : > { %v5981_v31 = vpop.f32.mrf.mxu0 }
 0x1a0   : > { %6264 = vst [vmem:[#allocation20_spill] sm:$0xff] %v5981_v31  ;;  %v5983_v29 = vpop.f32.mrf.mxu1 }
 0x1a1   : > { %v5985_v38 = vpop.f32.mrf.mxu0 }
 0x1a2   : > { %6265 = vst [vmem:[#allocation21_spill] sm:$0xff] %v5985_v38  ;;  %v5987_v24 = vpop.f32.mrf.mxu1 }
 0x1a3   : > { %v5989_v14 = vpop.f32.mrf.mxu0 }
 0x1a4   : > { %6266 = vst [vmem:[#allocation22_spill] sm:$0xff] %v5989_v14  ;;  %v5991_v59 = vpop.f32.mrf.mxu1 }
 0x1a5   : > { %6267 = vst [vmem:[#allocation23_spill] sm:$0xff] %v5991_v59  ;;  %v5993_v57 = vpop.f32.mrf.mxu0 }
 0x1a6   : > { %6268 = vst [vmem:[#allocation24_spill] sm:$0xff] %v5993_v57  ;;  %v5995_v55 = vpop.f32.mrf.mxu1 }
 0x1a7   : > { %6269 = vst [vmem:[#allocation25_spill] sm:$0xff] %v5995_v55  ;;  %v5997_v50 = vpop.f32.mrf.mxu0 }
 0x1a8   : > { %6270 = vst [vmem:[#allocation26_spill] sm:$0xff] %v5997_v50  ;;  %v5999_v47 = vpop.f32.mrf.mxu1 }
 0x1a9   : > { %6271 = vst [vmem:[#allocation27_spill] sm:$0xff] %v5999_v47  ;;  %v6001_v44 = vpop.f32.mrf.mxu0 }
 0x1aa   : > { %6272 = vst [vmem:[#allocation28_spill] sm:$0xff] %v6001_v44  ;;  %v6003_v31 = vpop.f32.mrf.mxu1 }
 0x1ab   : > { %6273 = vst [vmem:[#allocation29_spill] sm:$0xff] %v6003_v31  ;;  %v6005_v39 = vpop.f32.mrf.mxu0 }
 0x1ac   : > { %6274 = vst [vmem:[#allocation30_spill] sm:$0xff] %v6005_v39  ;;  %v6007_v38 = vpop.f32.mrf.mxu1 }
 0x1ad   : > { %6275 = vst [vmem:[#allocation31_spill] sm:$0xff] %v6007_v38  ;;  %v6009_v19 = vpop.f32.mrf.mxu0 }
 0x1ae   : > { %6276 = vst [vmem:[#allocation32_spill] sm:$0xff] %v6009_v19  ;;  %v6011_v14 = vpop.f32.mrf.mxu1 }
 0x1af   : > { %6277 = vst [vmem:[#allocation33_spill] sm:$0xff] %v6011_v14  ;;  %v6013_v59 = vpop.f32.mrf.mxu0 }
 0x1b0   : > { %6278 = vst [vmem:[#allocation34_spill] sm:$0xff] %v6013_v59  ;;  %v6015_v57 = vpop.f32.mrf.mxu1  ;;  %v2289_v59 = vadd.f32 %v4805_v21, %v5824_v7  ;;  %v2288_v7 = vadd.f32 %v5927_v41, %v5833_v16 }
 0x1b1   : > { %6279 = vst [vmem:[#allocation35_spill] sm:$0xff] %v6015_v57  ;;  %v6017_v55 = vpop.f32.mrf.mxu0 }
 0x1b2   : > { %6280 = vst [vmem:[#allocation36_spill] sm:$0xff] %v6017_v55  ;;  %v6019_v50 = vpop.f32.mrf.mxu1  ;;  %v2650_v16 = vadd.f32 %v5925_v0, %v2288_v7 }
 0x1b3   : > { %6281 = vst [vmem:[#allocation37_spill] sm:$0xff] %v6019_v50  ;;  %v6021_v47 = vpop.f32.mrf.mxu0  ;;  %v2287_v50 = vadd.f32 %v2160_v26, %v5827_v48  ;;  %v2293_v26 = vadd.f32 %v5931_v52, %v5836_v17  ;;  %v2291_v17 = vadd.f32 %v5935_v20, %v5839_v11  ;;  %v2297_v52 = vadd.f32 %v5947_v36, %v5848_v28 }
 0x1b4   : > { %6282 = vst [vmem:[#allocation38_spill] sm:$0xff] %v6021_v47  ;;  %v6023_v44 = vpop.f32.mrf.mxu1  ;;  %v2295_v11 = vadd.f32 %v5951_v1, %v5851_v30 }
 0x1b5   : > { %6283 = vst [vmem:[#allocation39_spill] sm:$0xff] %v6023_v44  ;;  %v6025_v31 = vpop.f32.mrf.mxu0 }
 0x1b6   : > { %6284 = vst [vmem:[#allocation40_spill] sm:$0xff] %v6025_v31  ;;  %v6027_v39 = vpop.f32.mrf.mxu1  ;;  %v2651_v31 = vadd.f32 %v5917_v2, %v2289_v59 }
 0x1b7   : > { %6285 = vst [vmem:[#allocation41_spill] sm:$0xff] %v6027_v39  ;;  %v6029_v19 = vpop.f32.mrf.mxu0  ;;  %v2290_v39 = vadd.f32 %v4806_v45, %v5830_v51 }
 0x1b8   : > { %6286 = vst [vmem:[#allocation42_spill] sm:$0xff] %v6029_v19  ;;  %v6031_v14 = vpop.f32.mrf.mxu1 }
 0x1b9   : > { %6287 = vst [vmem:[#allocation43_spill] sm:$0xff] %v6031_v14  ;;  %v6034_v57 = vpop.f32.mrf.mxu0  ;;  %v2649_v14 = vadd.f32 %v5921_v54, %v2287_v50  ;;  %v2652_v48 = vadd.f32 %v5923_v62, %v2290_v39  ;;  %v2655_v62 = vadd.f32 %v5929_v3, %v2293_v26 }
 0x1ba   : > { %6288 = vst [vmem:[#allocation44_spill] sm:$0xff] %v6034_v57  ;;  %v6036_v55 = vpop.f32.mrf.mxu1 }
 0x1bb   : > { %6289 = vst [vmem:[#allocation45_spill] sm:$0xff] %v6036_v55  ;;  %v6039_v47 = vpop.f32.mrf.mxu0 }
 0x1bc   : > { %6290 = vst [vmem:[#allocation46_spill] sm:$0xff] %v6039_v47  ;;  %v6041_v44 = vpop.f32.mrf.mxu1 }
 0x1bd   : > { %v4907_v38 = vpop.f32.mrf.mxu0 }
 0x1be   : > { %v4873_v19 = vpop.f32.mrf.mxu1 }
 0x1bf   : > { %v3013_v21 = vadd.f32 %v4873_v19, %v2651_v31  ;;  %v3246_v57 = vpop.f32.mrf.mxu0 }
 0x1c0   : > { %v2884_v55 = vpop.f32.mrf.mxu1 }
 0x1c1   : > { %v3375_v47 = vadd.f32 %v4907_v38, %v3013_v21  ;;  %v3011_v59 = vadd.f32 %v2884_v55, %v2649_v14  ;;  %v4908_v2 = vpop.f32.mrf.mxu0  ;;  %v2294_v55 = vadd.f32 %v5939_v61, %v5842_v22  ;;  %v2292_v14 = vadd.f32 %v5943_v43, %v5845_v27 }
 0x1c2   : > { %v4874_v51 = vpop.f32.mrf.mxu1  ;;  %v2653_v43 = vadd.f32 %v5933_v5, %v2291_v17  ;;  %v2298_v5 = vadd.f32 %v5955_v49, %v5854_v10 }
 0x1c3   : > { %v4448_v50 = vpack.c.bf16 %v3375_v47, %v3375_v47  ;;  %v3373_v31 = vadd.f32 %v3246_v57, %v3011_v59  ;;  %v3014_v39 = vadd.f32 %v4874_v51, %v2652_v48  ;;  %v3249_v54 = vpop.f32.mrf.mxu0  ;;  %v2656_v19 = vadd.f32 %v5937_v4, %v2294_v55 }
 0x1c4   : > { %v2887_v38 = vpop.f32.mrf.mxu1  ;;  %v2654_v7 = vadd.f32 %v5941_v25, %v2292_v14  ;;  %v2659_v59 = vadd.f32 %v5945_v60, %v2297_v52  ;;  %v3444_v51 = vmul.f32 %v3375_v47, %v3375_v47  ;;  %v2301_v60 = vadd.f32 %v5963_v40, %v5860_v53 }
 0x1c5   : > { %3645 = vst.msk [vmem:[%s6055_s9 + $0x8] sm:$0xf] %vm3642_vm2, %v4448_v50  ;;  %v4446_v45 = vpack.c.bf16 %v3373_v31, %v3373_v31  ;;  %v3376_v0 = vadd.f32 %v4908_v2, %v3014_v39  ;;  %v3012_v57 = vadd.f32 %v2887_v38, %v2650_v16  ;;  %v4911_v41 = vpop.f32.mrf.mxu0  ;;  %v3442_v21 = vmul.f32 %v3373_v31, %v3373_v31 }
 0x1c6   : > { %v4877_v22 = vpop.f32.mrf.mxu1  ;;  %v2657_v2 = vadd.f32 %v5949_v46, %v2295_v11 }
 0x1c7   : > { %3643 = vst.msk [vmem:[%s6055_s9] sm:$0xf] %vm3642_vm2, %v4446_v45  ;;  %v4449_v27 = vpack.c.bf16 %v3376_v0, %v3376_v0  ;;  %v3374_v20 = vadd.f32 %v3249_v54, %v3012_v57  ;;  %v3017_v61 = vadd.f32 %v4877_v22, %v2655_v62  ;;  %v3262_v3 = vpop.f32.mrf.mxu0  ;;  %v2296_v54 = vadd.f32 %v5959_v32, %v5857_v15 }
 0x1c8   : > { %v2900_v48 = vpop.f32.mrf.mxu1  ;;  %v3445_v10 = vmul.f32 %v3376_v0, %v3376_v0  ;;  %v2660_v62 = vadd.f32 %v5953_v42, %v2298_v5 }
 0x1c9   : > { %3646 = vst.msk [vmem:[%s6055_s9 + $0xc] sm:$0xf] %vm3642_vm2, %v4449_v27  ;;  %v3405_v28 = vadd.f32 %v3374_v20, %v3373_v31  ;;  %v3443_v30 = vmul.f32 %v3374_v20, %v3374_v20  ;;  %v4447_v36 = vpack.c.bf16 %v3374_v20, %v3374_v20  ;;  %v3379_v1 = vadd.f32 %v4911_v41, %v3017_v61  ;;  %v4912_v26 = vpop.f32.mrf.mxu0 }
 0x1ca   : > { %v3015_v4 = vadd.f32 %v2900_v48, %v2653_v43  ;;  %v4878_v25 = vpop.f32.mrf.mxu1  ;;  %v2658_v22 = vadd.f32 %v5957_v33, %v2296_v54  ;;  %v2663_v27 = vadd.f32 %v5961_v63, %v2301_v60  ;;  %v2300_v33 = vadd.f32 %v5975_v13, %v5869_v12 }
 0x1cb   : > { %v3406_v16 = vadd.f32 %v3405_v28, %v3375_v47  ;;  %v3474_v50 = vadd.f32 %v3443_v30, %v3442_v21  ;;  %3644 = vst.msk [vmem:[%s6055_s9 + $0x4] sm:$0xf] %vm3642_vm2, %v4447_v36  ;;  %v4452_v31 = vpack.c.bf16 %v3379_v1, %v3379_v1  ;;  %v3265_v39 = vpop.f32.mrf.mxu0  ;;  %v3018_v17 = vadd.f32 %v4878_v25, %v2656_v19 }
 0x1cc   : > { %v3377_v46 = vadd.f32 %v3262_v3, %v3015_v4  ;;  %v2903_v55 = vpop.f32.mrf.mxu1  ;;  %v2302_v21 = vadd.f32 %v5971_v56, %v5866_v9  ;;  %v3448_v48 = vmul.f32 %v3379_v1, %v3379_v1 }
 0x1cd   : > { %v3475_v49 = vadd.f32 %v3474_v50, %v3444_v51  ;;  %3649 = vst.msk [vmem:[%s6055_s9 + $0x18] sm:$0xf] %vm3642_vm2, %v4452_v31  ;;  %v3407_v14 = vadd.f32 %v3406_v16, %v3376_v0  ;;  %v3016_v47 = vadd.f32 %v2903_v55, %v2654_v7  ;;  %v4915_v38 = vpop.f32.mrf.mxu0  ;;  %v3380_v41 = vadd.f32 %v4912_v26, %v3018_v17 }
 0x1ce   : > { %v3446_v45 = vmul.f32 %v3377_v46, %v3377_v46  ;;  %v4450_v57 = vpack.c.bf16 %v3377_v46, %v3377_v46  ;;  %v4881_v15 = vpop.f32.mrf.mxu1  ;;  %v2299_v0 = vadd.f32 %v5967_v18, %v5863_v58  ;;  %v2303_v16 = vadd.f32 %v5983_v29, %v5875_v35  ;;  %v6291_v29 = vld [vmem:[#allocation18_spill] sm:$0xff] }
 0x1cf   : > { %v3408_v32 = vadd.f32 %v3407_v14, %v3377_v46  ;;  %v3476_v52 = vadd.f32 %v3475_v49, %v3445_v10  ;;  %v3378_v53 = vadd.f32 %v3265_v39, %v3016_v47  ;;  %v3021_v40 = vadd.f32 %v4881_v15, %v2659_v59  ;;  %v3278_v11 = vpop.f32.mrf.mxu0 }
 0x1d0   : > { %3647 = vst.msk [vmem:[%s6055_s9 + $0x10] sm:$0xf] %vm3642_vm2, %v4450_v57  ;;  %v4453_v42 = vpack.c.bf16 %v3380_v41, %v3380_v41  ;;  %v2916_v20 = vpop.f32.mrf.mxu1  ;;  %v2305_v59 = vadd.f32 %v5979_v34, %v5872_v23  ;;  %v3449_v9 = vmul.f32 %v3380_v41, %v3380_v41  ;;  %v2306_v50 = vadd.f32 %v5987_v24, %v5878_v6  ;;  %v6292_v6 = vld [vmem:[#allocation19_spill] sm:$0xff] }
 0x1d1   : > { %v3477_v61 = vadd.f32 %v3476_v52, %v3446_v45  ;;  %v3409_v3 = vadd.f32 %v3408_v32, %v3378_v53  ;;  %v3447_v43 = vmul.f32 %v3378_v53, %v3378_v53  ;;  %v4451_v19 = vpack.c.bf16 %v3378_v53, %v3378_v53  ;;  %v4916_v7 = vpop.f32.mrf.mxu0  ;;  %v6294_v32 = vld [vmem:[#allocation21_spill] sm:$0xff] }
 0x1d2   : > { %3650 = vst.msk [vmem:[%s6055_s9 + $0x1c] sm:$0xf] %vm3642_vm2, %v4453_v42  ;;  %v3383_v63 = vadd.f32 %v4915_v38, %v3021_v40  ;;  %v3019_v58 = vadd.f32 %v2916_v20, %v2657_v2  ;;  %v4882_v18 = vpop.f32.mrf.mxu1  ;;  %v2664_v17 = vadd.f32 %v5969_v8, %v2302_v21  ;;  %v2662_v10 = vadd.f32 %v6291_v29, %v2300_v33 }
 0x1d3   : > { %v3410_v28 = vadd.f32 %v3409_v3, %v3379_v1  ;;  %v3478_v30 = vadd.f32 %v3477_v61, %v3447_v43  ;;  %3648 = vst.msk [vmem:[%s6055_s9 + $0x14] sm:$0xf] %vm3642_vm2, %v4451_v19  ;;  %v3022_v36 = vadd.f32 %v4882_v18, %v2660_v62  ;;  %v3281_v26 = vpop.f32.mrf.mxu0  ;;  %v2661_v1 = vadd.f32 %v5965_v37, %v2299_v0  ;;  %v6295_v61 = vld [vmem:[#allocation5_spill] sm:$0xff]  ;;  %v6296_v3 = vld [vmem:[#allocation23_spill] sm:$0xff] }
 0x1d4   : > { %v4456_v56 = vpack.c.bf16 %v3383_v63, %v3383_v63  ;;  %v3381_v5 = vadd.f32 %v3278_v11, %v3019_v58  ;;  %v2919_v12 = vpop.f32.mrf.mxu1  ;;  %v2667_v24 = vadd.f32 %v6292_v6, %v2305_v59  ;;  %v2668_v52 = vadd.f32 %v6294_v32, %v2306_v50  ;;  %v6297_v58 = vld [vmem:[#allocation6_spill] sm:$0xff]  ;;  %v6298_v18 = vld [vmem:[#allocation25_spill] sm:$0xff]  ;;  %v6300_v59 = vld [vmem:[#allocation27_spill] sm:$0xff] }
 0x1d5   : > { %v3479_v13 = vadd.f32 %v3478_v30, %v3448_v48  ;;  %v3411_v4 = vadd.f32 %v3410_v28, %v3380_v41  ;;  %v3384_v2 = vadd.f32 %v4916_v7, %v3022_v36  ;;  %v3020_v25 = vadd.f32 %v2919_v12, %v2658_v22  ;;  %v4919_v51 = vpop.f32.mrf.mxu0  ;;  %v6293_v41 = vld [vmem:[#allocation20_spill] sm:$0xff] }
 0x1d6   : > { %3653 = vst.msk [vmem:[%s6055_s9 + $0x28] sm:$0xf] %vm3642_vm2, %v4456_v56  ;;  %v4454_v23 = vpack.c.bf16 %v3381_v5, %v3381_v5  ;;  %v4885_v34 = vpop.f32.mrf.mxu1  ;;  %v3450_v39 = vmul.f32 %v3381_v5, %v3381_v5  ;;  %v2665_v15 = vadd.f32 %v6293_v41, %v2303_v16  ;;  %v3452_v22 = vmul.f32 %v3383_v63, %v3383_v63  ;;  %v6306_v41 = vld [vmem:[#allocation28_spill] sm:$0xff] }
 0x1d7   : > { %v3412_v31 = vadd.f32 %v3411_v4, %v3381_v5  ;;  %v3480_v54 = vadd.f32 %v3479_v13, %v3449_v9  ;;  %v4457_v60 = vpack.c.bf16 %v3384_v2, %v3384_v2  ;;  %v3294_v46 = vpop.f32.mrf.mxu0  ;;  %v3382_v37 = vadd.f32 %v3281_v26, %v3020_v25  ;;  %v6299_v26 = vld [vmem:[#allocation7_spill] sm:$0xff]  ;;  %v6301_v4 = vld [vmem:[#allocation8_spill] sm:$0xff]  ;;  %v6302_v25 = vld [vmem:[#allocation29_spill] sm:$0xff] }
 0x1d8   : > { %3651 = vst.msk [vmem:[%s6055_s9 + $0x20] sm:$0xf] %vm3642_vm2, %v4454_v23  ;;  %v3025_v55 = vadd.f32 %v4885_v34, %v2663_v27  ;;  %v2932_v35 = vpop.f32.mrf.mxu1  ;;  %v2304_v43 = vadd.f32 %v6296_v3, %v6295_v61  ;;  %v2309_v48 = vadd.f32 %v6298_v18, %v6297_v58  ;;  %v3453_v28 = vmul.f32 %v3384_v2, %v3384_v2  ;;  %v6309_v3 = vld [vmem:[#allocation10_spill] sm:$0xff]  ;;  %v6311_v18 = vld [vmem:[#allocation11_spill] sm:$0xff] }
 0x1d9   : > { %v3481_v49 = vadd.f32 %v3480_v54, %v3450_v39  ;;  %3654 = vst.msk [vmem:[%s6055_s9 + $0x2c] sm:$0xf] %vm3642_vm2, %v4457_v60  ;;  %v3023_v14 = vadd.f32 %v2932_v35, %v2661_v1  ;;  %v4920_v47 = vpop.f32.mrf.mxu0  ;;  %v3413_v38 = vadd.f32 %v3412_v31, %v3382_v37  ;;  %v3451_v62 = vmul.f32 %v3382_v37, %v3382_v37  ;;  %v6303_v60 = vld [vmem:[#allocation22_spill] sm:$0xff]  ;;  %v6304_v35 = vld [vmem:[#allocation24_spill] sm:$0xff] }
 0x1da   : > { %v4455_v45 = vpack.c.bf16 %v3382_v37, %v3382_v37  ;;  %v3387_v57 = vadd.f32 %v4919_v51, %v3025_v55  ;;  %v4886_v8 = vpop.f32.mrf.mxu1  ;;  %v2307_v9 = vadd.f32 %v6300_v59, %v6299_v26  ;;  %v2310_v51 = vadd.f32 %v6302_v25, %v6301_v4 }
 0x1db   : > { %v3385_v53 = vadd.f32 %v3294_v46, %v3023_v14  ;;  %v3026_v40 = vadd.f32 %v4886_v8, %v2664_v17  ;;  %v3297_v11 = vpop.f32.mrf.mxu0  ;;  %v3414_v27 = vadd.f32 %v3413_v38, %v3383_v63  ;;  %v3482_v0 = vadd.f32 %v3481_v49, %v3451_v62  ;;  %v6305_v14 = vld [vmem:[#allocation26_spill] sm:$0xff] }
 0x1dc   : > { %3652 = vst.msk [vmem:[%s6055_s9 + $0x24] sm:$0xf] %vm3642_vm2, %v4455_v45  ;;  %v4460_v42 = vpack.c.bf16 %v3387_v57, %v3387_v57  ;;  %v2935_v20 = vpop.f32.mrf.mxu1  ;;  %v2666_v46 = vadd.f32 %v6303_v60, %v2304_v43  ;;  %v2671_v29 = vadd.f32 %v6304_v35, %v2309_v48  ;;  %v3456_v38 = vmul.f32 %v3387_v57, %v3387_v57  ;;  %v6312_v48 = vld [vmem:[#allocation35_spill] sm:$0xff]  ;;  %v6317_v35 = vld [vmem:[#allocation34_spill] sm:$0xff] }
 0x1dd   : > { %v4458_v19 = vpack.c.bf16 %v3385_v53, %v3385_v53  ;;  %v3388_v7 = vadd.f32 %v4920_v47, %v3026_v40  ;;  %v3024_v21 = vadd.f32 %v2935_v20, %v2662_v10  ;;  %v4923_v33 = vpop.f32.mrf.mxu0  ;;  %v3483_v30 = vadd.f32 %v3482_v0, %v3452_v22  ;;  %v6307_v22 = vld [vmem:[#allocation9_spill] sm:$0xff] }
 0x1de   : > { %3657 = vst.msk [vmem:[%s6055_s9 + $0x38] sm:$0xf] %vm3642_vm2, %v4460_v42  ;;  %v3415_v63 = vadd.f32 %v3414_v27, %v3384_v2  ;;  %v4889_v36 = vpop.f32.mrf.mxu1  ;;  %v3454_v16 = vmul.f32 %v3385_v53, %v3385_v53  ;;  %v2669_v47 = vadd.f32 %v6305_v14, %v2307_v9  ;;  %v6308_v27 = vld [vmem:[#allocation31_spill] sm:$0xff]  ;;  %v6318_v14 = vld [vmem:[#allocation36_spill] sm:$0xff] }
 0x1df   : > { %3655 = vst.msk [vmem:[%s6055_s9 + $0x30] sm:$0xf] %vm3642_vm2, %v4458_v19  ;;  %v4461_v56 = vpack.c.bf16 %v3388_v7, %v3388_v7  ;;  %v3386_v5 = vadd.f32 %v3297_v11, %v3024_v21  ;;  %v3029_v12 = vadd.f32 %v4889_v36, %v2667_v24  ;;  %v3310_v13 = vpop.f32.mrf.mxu0  ;;  %v3484_v50 = vadd.f32 %v3483_v30, %v3453_v28 }
 0x1e0   : > { %v3416_v1 = vadd.f32 %v3415_v63, %v3385_v53  ;;  %v2948_v23 = vpop.f32.mrf.mxu1  ;;  %v2308_v0 = vadd.f32 %v6308_v27, %v6307_v22  ;;  %v2311_v28 = vadd.f32 %v6312_v48, %v6311_v18  ;;  %v6321_v27 = vld [vmem:[#allocation14_spill] sm:$0xff] }
 0x1e1   : > { %3658 = vst.msk [vmem:[%s6055_s9 + $0x3c] sm:$0xf] %vm3642_vm2, %v4461_v56  ;;  %v3455_v2 = vmul.f32 %v3386_v5, %v3386_v5  ;;  %v4459_v34 = vpack.c.bf16 %v3386_v5, %v3386_v5  ;;  %v3391_v31 = vadd.f32 %v4923_v33, %v3029_v12  ;;  %v3027_v39 = vadd.f32 %v2948_v23, %v2665_v15  ;;  %v4924_v54 = vpop.f32.mrf.mxu0  ;;  %v6313_v12 = vld [vmem:[#allocation12_spill] sm:$0xff] }
 0x1e2   : > { %v3485_v17 = vadd.f32 %v3484_v50, %v3454_v16  ;;  %v3417_v37 = vadd.f32 %v3416_v1, %v3386_v5  ;;  %v4890_v55 = vpop.f32.mrf.mxu1  ;;  %v2672_v15 = vadd.f32 %v6306_v41, %v2310_v51  ;;  %v6315_v16 = vld [vmem:[#allocation30_spill] sm:$0xff]  ;;  %v6319_v41 = vld [vmem:[#allocation13_spill] sm:$0xff] }
 0x1e3   : > { %3656 = vst.msk [vmem:[%s6055_s9 + $0x34] sm:$0xf] %vm3642_vm2, %v4459_v34  ;;  %v4464_v10 = vpack.c.bf16 %v3391_v31, %v3391_v31  ;;  %v3389_v6 = vadd.f32 %v3310_v13, %v3027_v39  ;;  %v3030_v24 = vadd.f32 %v4890_v55, %v2668_v52  ;;  %v3313_v49 = vpop.f32.mrf.mxu0  ;;  %v3457_v52 = vmul.f32 %v3388_v7, %v3388_v7  ;;  %v6314_v13 = vld [vmem:[#allocation37_spill] sm:$0xff] }
 0x1e4   : > { %v3418_v62 = vadd.f32 %v3417_v37, %v3387_v57  ;;  %v3486_v45 = vadd.f32 %v3485_v17, %v3455_v2  ;;  %v2951_v8 = vpop.f32.mrf.mxu1  ;;  %v6310_v57 = vld [vmem:[#allocation33_spill] sm:$0xff]  ;;  %v2314_v4 = vadd.f32 %v6314_v13, %v6313_v12  ;;  %v2670_v50 = vadd.f32 %v6315_v16, %v2308_v0  ;;  %v6328_v16 = vld [vmem:[#allocation40_spill] sm:$0xff] }
 0x1e5   : > { %3661 = vst.msk [vmem:[%s6055_s9 + $0x48] sm:$0xf] %vm3642_vm2, %v4464_v10  ;;  %v4462_v32 = vpack.c.bf16 %v3389_v6, %v3389_v6  ;;  %v3392_v53 = vadd.f32 %v4924_v54, %v3030_v24  ;;  %v3028_v40 = vadd.f32 %v2951_v8, %v2666_v46  ;;  %v4927_v11 = vpop.f32.mrf.mxu0  ;;  %v2313_v43 = vadd.f32 %v6310_v57, %v6309_v3  ;;  %v6316_v54 = vld [vmem:[#allocation32_spill] sm:$0xff]  ;;  %v6322_v0 = vld [vmem:[#allocation41_spill] sm:$0xff] }
 0x1e6   : > { %v3487_v42 = vadd.f32 %v3486_v45, %v3456_v38  ;;  %v3419_v20 = vadd.f32 %v3418_v62, %v3388_v7  ;;  %v4893_v61 = vpop.f32.mrf.mxu1  ;;  %v3458_v63 = vmul.f32 %v3389_v6, %v3389_v6  ;;  %v3460_v46 = vmul.f32 %v3391_v31, %v3391_v31  ;;  %v6327_v12 = vld [vmem:[#allocation45_spill] sm:$0xff] }
 0x1e7   : > { %3659 = vst.msk [vmem:[%s6055_s9 + $0x40] sm:$0xf] %vm3642_vm2, %v4462_v32  ;;  %v4465_v19 = vpack.c.bf16 %v3392_v53, %v3392_v53  ;;  %v3390_v21 = vadd.f32 %v3313_v49, %v3028_v40  ;;  %v3033_v33 = vadd.f32 %v4893_v61, %v2671_v29  ;;  %v3326_v58 = vpop.f32.mrf.mxu0  ;;  %v2675_v60 = vadd.f32 %v6316_v54, %v2313_v43  ;;  %v6329_v54 = vld [vmem:[#allocation42_spill] sm:$0xff] }
 0x1e8   : > { %v3420_v30 = vadd.f32 %v3419_v20, %v3389_v6  ;;  %v3488_v36 = vadd.f32 %v3487_v42, %v3457_v52  ;;  %v2964_v26 = vpop.f32.mrf.mxu1  ;;  %v2673_v29 = vadd.f32 %v6317_v35, %v2311_v28  ;;  %v3461_v38 = vmul.f32 %v3392_v53, %v3392_v53  ;;  %v6330_v35 = vld [vmem:[#allocation17_spill] sm:$0xff] }
 0x1e9   : > { %3662 = vst.msk [vmem:[%s6055_s9 + $0x4c] sm:$0xf] %vm3642_vm2, %v4465_v19  ;;  %v3459_v7 = vmul.f32 %v3390_v21, %v3390_v21  ;;  %v4463_v59 = vpack.c.bf16 %v3390_v21, %v3390_v21  ;;  %v3395_v9 = vadd.f32 %v4927_v11, %v3033_v33  ;;  %v3031_v56 = vadd.f32 %v2964_v26, %v2669_v47  ;;  %v4928_v5 = vpop.f32.mrf.mxu0  ;;  %v6323_v33 = vld [vmem:[#allocation15_spill] sm:$0xff] }
 0x1ea   : > { %v3489_v25 = vadd.f32 %v3488_v36, %v3458_v63  ;;  %v3421_v51 = vadd.f32 %v3420_v30, %v3390_v21  ;;  %v4894_v1 = vpop.f32.mrf.mxu1  ;;  %v2676_v47 = vadd.f32 %v6318_v14, %v2314_v4  ;;  %v2317_v52 = vadd.f32 %v6322_v0, %v6321_v27  ;;  %v6325_v63 = vld [vmem:[#allocation38_spill] sm:$0xff]  ;;  %v6331_v14 = vld [vmem:[#allocation44_spill] sm:$0xff] }
 0x1eb   : > { %3660 = vst.msk [vmem:[%s6055_s9 + $0x44] sm:$0xf] %vm3642_vm2, %v4463_v59  ;;  %v4468_v23 = vpack.c.bf16 %v3395_v9, %v3395_v9  ;;  %v3393_v2 = vadd.f32 %v3326_v58, %v3031_v56  ;;  %v3034_v34 = vadd.f32 %v4894_v1, %v2672_v15  ;;  %v3329_v39 = vpop.f32.mrf.mxu0  ;;  %v6320_v15 = vld [vmem:[#allocation39_spill] sm:$0xff]  ;;  %v3464_v4 = vmul.f32 %v3395_v9, %v3395_v9 }
 0x1ec   : > { %v3422_v17 = vadd.f32 %v3421_v51, %v3391_v31  ;;  %v3490_v37 = vadd.f32 %v3489_v25, %v3459_v7  ;;  %v2967_v55 = vpop.f32.mrf.mxu1  ;;  %v2312_v31 = vadd.f32 %v6320_v15, %v6319_v41  ;;  %v6324_v58 = vld [vmem:[#allocation43_spill] sm:$0xff] }
 0x1ed   : > { %3665 = vst.msk [vmem:[%s6055_s9 + $0x58] sm:$0xf] %vm3642_vm2, %v4468_v23  ;;  %v4466_v10 = vpack.c.bf16 %v3393_v2, %v3393_v2  ;;  %v3396_v6 = vadd.f32 %v4928_v5, %v3034_v34  ;;  %v3032_v24 = vadd.f32 %v2967_v55, %v2670_v50  ;;  %v4931_v49 = vpop.f32.mrf.mxu0  ;;  %v3462_v20 = vmul.f32 %v3393_v2, %v3393_v2  ;;  %v6326_v5 = vld [vmem:[#allocation16_spill] sm:$0xff] }
 0x1ee   : > { %v3491_v62 = vadd.f32 %v3490_v37, %v3460_v46  ;;  %v3423_v45 = vadd.f32 %v3422_v17, %v3392_v53  ;;  %v4897_v8 = vpop.f32.mrf.mxu1  ;;  %v2315_v18 = vadd.f32 %v6324_v58, %v6323_v33  ;;  %v2674_v36 = vadd.f32 %v6325_v63, %v2312_v31 }
 0x1ef   : > { %3663 = vst.msk [vmem:[%s6055_s9 + $0x50] sm:$0xf] %vm3642_vm2, %v4466_v10  ;;  %v4469_v32 = vpack.c.bf16 %v3396_v6, %v3396_v6  ;;  %v3394_v40 = vadd.f32 %v3329_v39, %v3032_v24  ;;  %v3037_v11 = vadd.f32 %v4897_v8, %v2675_v60  ;;  %v3342_v22 = vpop.f32.mrf.mxu0  ;;  %v2318_v13 = vadd.f32 %v6327_v12, %v6326_v5 }
 0x1f0   : > { %v3424_v42 = vadd.f32 %v3423_v45, %v3393_v2  ;;  %v3492_v61 = vadd.f32 %v3491_v62, %v3461_v38  ;;  %v2980_v3 = vpop.f32.mrf.mxu1  ;;  %v2679_v50 = vadd.f32 %v6328_v16, %v2317_v52  ;;  %v2677_v60 = vadd.f32 %v6329_v54, %v2315_v18 }
 0x1f1   : > { %3666 = vst.msk [vmem:[%s6055_s9 + $0x5c] sm:$0xf] %vm3642_vm2, %v4469_v32  ;;  %v3463_v53 = vmul.f32 %v3394_v40, %v3394_v40  ;;  %v4467_v57 = vpack.c.bf16 %v3394_v40, %v3394_v40  ;;  %v3399_v43 = vadd.f32 %v4931_v49, %v3037_v11  ;;  %v3035_v19 = vadd.f32 %v2980_v3, %v2673_v29  ;;  %v4932_v21 = vpop.f32.mrf.mxu0 }
 0x1f2   : > { %v3493_v48 = vadd.f32 %v3492_v61, %v3462_v20  ;;  %v3425_v28 = vadd.f32 %v3424_v42, %v3394_v40  ;;  %v4898_v30 = vpop.f32.mrf.mxu1  ;;  %v3465_v46 = vmul.f32 %v3396_v6, %v3396_v6 }
 0x1f3   : > { %3664 = vst.msk [vmem:[%s6055_s9 + $0x54] sm:$0xf] %vm3642_vm2, %v4467_v57  ;;  %v4472_v26 = vpack.c.bf16 %v3399_v43, %v3399_v43  ;;  %v3397_v7 = vadd.f32 %v3342_v22, %v3035_v19  ;;  %v3038_v59 = vadd.f32 %v4898_v30, %v2676_v47  ;;  %v3345_v56 = vpop.f32.mrf.mxu0  ;;  %v2680_v47 = vadd.f32 %v6331_v14, %v2318_v13  ;;  %v6332_v22 = vld [vmem:[#allocation46_spill] sm:$0xff] }
 0x1f4   : > { %v3426_v25 = vadd.f32 %v3425_v28, %v3395_v9  ;;  %v3494_v51 = vadd.f32 %v3493_v48, %v3463_v53  ;;  %v2983_v1 = vpop.f32.mrf.mxu1  ;;  %v2316_v9 = vadd.f32 %v6041_v44, %v6330_v35  ;;  %v3468_v20 = vmul.f32 %v3399_v43, %v3399_v43 }
 0x1f5   : > { %3669 = vst.msk [vmem:[%s6055_s9 + $0x68] sm:$0xf] %vm3642_vm2, %v4472_v26  ;;  %v4470_v23 = vpack.c.bf16 %v3397_v7, %v3397_v7  ;;  %v3400_v2 = vadd.f32 %v4932_v21, %v3038_v59  ;;  %v3036_v34 = vadd.f32 %v2983_v1, %v2674_v36  ;;  %v4935_v39 = vpop.f32.mrf.mxu0  ;;  %v3466_v62 = vmul.f32 %v3397_v7, %v3397_v7 }
 0x1f6   : > { %v3495_v17 = vadd.f32 %v3494_v51, %v3464_v4  ;;  %v3427_v37 = vadd.f32 %v3426_v25, %v3396_v6  ;;  %v4901_v55 = vpop.f32.mrf.mxu1  ;;  %v2678_v27 = vadd.f32 %v6332_v22, %v2316_v9 }
 0x1f7   : > { %3667 = vst.msk [vmem:[%s6055_s9 + $0x60] sm:$0xf] %vm3642_vm2, %v4470_v23  ;;  %v4473_v29 = vpack.c.bf16 %v3400_v2, %v3400_v2  ;;  %v3398_v10 = vadd.f32 %v3345_v56, %v3036_v34  ;;  %v3041_v24 = vadd.f32 %v4901_v55, %v2679_v50  ;;  %v3358_v49 = vpop.f32.mrf.mxu0  ;;  %v3469_v33 = vmul.f32 %v3400_v2, %v3400_v2 }
 0x1f8   : > { %v3428_v38 = vadd.f32 %v3427_v37, %v3397_v7  ;;  %v3496_v45 = vadd.f32 %v3495_v17, %v3465_v46  ;;  %v2996_v8 = vpop.f32.mrf.mxu1 }
 0x1f9   : > { %3670 = vst.msk [vmem:[%s6055_s9 + $0x6c] sm:$0xf] %vm3642_vm2, %v4473_v29  ;;  %v3467_v6 = vmul.f32 %v3398_v10, %v3398_v10  ;;  %v4471_v41 = vpack.c.bf16 %v3398_v10, %v3398_v10  ;;  %v3403_v15 = vadd.f32 %v4935_v39, %v3041_v24  ;;  %v3039_v44 = vadd.f32 %v2996_v8, %v2677_v60  ;;  %v4936_v11 = vpop.f32.mrf.mxu0 }
 0x1fa   : > { %v3497_v31 = vadd.f32 %v3496_v45, %v3466_v62  ;;  %v3429_v32 = vadd.f32 %v3428_v38, %v3398_v10  ;;  %v4902_v40 = vpop.f32.mrf.mxu1 }
 0x1fb   : > { %3668 = vst.msk [vmem:[%s6055_s9 + $0x64] sm:$0xf] %vm3642_vm2, %v4471_v41  ;;  %v4476_v0 = vpack.c.bf16 %v3403_v15, %v3403_v15  ;;  %v3401_v52 = vadd.f32 %v3358_v49, %v3039_v44  ;;  %v3042_v42 = vadd.f32 %v4902_v40, %v2680_v47  ;;  %v3361_v48 = vpop.f32.mrf.mxu0  ;;  %v3472_v5 = vmul.f32 %v3403_v15, %v3403_v15 }
 0x1fc   : > { %v3430_v61 = vadd.f32 %v3429_v32, %v3399_v43  ;;  %v3498_v3 = vadd.f32 %v3497_v31, %v3467_v6  ;;  %v2999_v53 = vpop.f32.mrf.mxu1 }
 0x1fd   : > { %3673 = vst.msk [vmem:[%s6055_s9 + $0x78] sm:$0xf] %vm3642_vm2, %v4476_v0  ;;  %v4474_v57 = vpack.c.bf16 %v3401_v52, %v3401_v52  ;;  %v3404_v19 = vadd.f32 %v4936_v11, %v3042_v42  ;;  %v3040_v21 = vadd.f32 %v2999_v53, %v2678_v27  ;;  %v3470_v36 = vmul.f32 %v3401_v52, %v3401_v52 }
 0x1fe   : > { %v3499_v58 = vadd.f32 %v3498_v3, %v3468_v20  ;;  %v3431_v18 = vadd.f32 %v3430_v61, %v3400_v2 }
 0x1ff   : > { %3671 = vst.msk [vmem:[%s6055_s9 + $0x70] sm:$0xf] %vm3642_vm2, %v4474_v57  ;;  %v4477_v28 = vpack.c.bf16 %v3404_v19, %v3404_v19  ;;  %v3402_v30 = vadd.f32 %v3361_v48, %v3040_v21  ;;  %v3473_v4 = vmul.f32 %v3404_v19, %v3404_v19 }
 0x200   : > { %v3432_v63 = vadd.f32 %v3431_v18, %v3401_v52  ;;  %v3500_v43 = vadd.f32 %v3499_v58, %v3469_v33 }
 0x201   : > { %3674 = vst.msk [vmem:[%s6055_s9 + $0x7c] sm:$0xf] %vm3642_vm2, %v4477_v28  ;;  %v3471_v26 = vmul.f32 %v3402_v30, %v3402_v30  ;;  %v4475_v7 = vpack.c.bf16 %v3402_v30, %v3402_v30 }
 0x202   : > { %v3501_v59 = vadd.f32 %v3500_v43, %v3470_v36  ;;  %v3433_v56 = vadd.f32 %v3432_v63, %v3402_v30 }
 0x203   : > { %3672 = vst.msk [vmem:[%s6055_s9 + $0x74] sm:$0xf] %vm3642_vm2, %v4475_v7 }
 0x204   : > { %v3434_v12 = vadd.f32 %v3433_v56, %v3403_v15  ;;  %v3502_v13 = vadd.f32 %v3501_v59, %v3471_v26 }
 0x206   : > { %v3435_v25 = vadd.f32 %v3434_v12, %v3404_v19  ;;  %v3503_v51 = vadd.f32 %v3502_v13, %v3472_v5 }
 0x208   : > { %v3436_v1 = vrot.slane %v3435_v25, 4  ;;  %v3504_v16 = vadd.f32 %v3503_v51, %v3473_v4 }
 0x20a   : > { %v3437_v50 = vadd.f32 %v3436_v1, %v3435_v25  ;;  %v3505_v23 = vrot.slane %v3504_v16, 4 }
 0x20c   : > { %v3438_v2 = vrot.slane %v3437_v50, 2  ;;  %v3506_v34 = vadd.f32 %v3505_v23, %v3504_v16 }
 0x20e   : > { %v3439_v39 = vadd.f32 %v3438_v2, %v3437_v50  ;;  %v3507_v54 = vrot.slane %v3506_v34, 2 }
 0x210   : > { %v3440_v60 = vrot.slane %v3439_v39, 1  ;;  %v3508_v46 = vadd.f32 %v3507_v54, %v3506_v34 }
 0x212   : > { %v3441_v17 = vadd.f32 %v3440_v60, %v3439_v39  ;;  %v3509_v37 = vrot.slane %v3508_v46, 1 }
 0x214   : > { %v3510_v55 = vadd.f32 %v3509_v37, %v3508_v46  ;;  %3512 = vst.msk [vmem:[%s192_s18] sm:$0x1] %vm3511_vm3, %v3441_v17 }
 0x216   : > { %3513 = vst.msk [vmem:[%s192_s18 + $0x1] sm:$0x1] %vm3511_vm3, %v3510_v55 }
 0x217   : > { %5162 = shalt.err (!%p5159_p5)
}
 0x218   : > { %s5163_s4 = scalar_lea.hbm %s3702_s26, 32  ;;  %s5167_s8 = scalar_lea.hbm %s6246_s3, 64 }
 0x219   : > { %p5164_p6 = scmp.ne.s32.totalorder %s3702_s26, %s5163_s4  ;;  %p5168_p10 = scmp.lt.s32.totalorder %s3702_s26, %s6246_s3 }
 0x21a   : > { %p5169_p11 = scmp.lt.s32.totalorder %s5167_s8, %s5163_s4 }
 0x21b   : > { %p5165_p7 = pnand %p5164_p6, %p5288_p4 }
 0x21c   : > { %p5170_p12 = por %p5169_p11, %p5168_p10 }
 0x21d   : > { %p5166_p9 = pneg %p5165_p7 }
 0x21f   : > { %p5171_p13 = pnand %p5170_p12, %p5166_p9 }
 0x221   : > { %5174 = shalt.err (!%p5171_p13)
}
 0x222   : > { %4950 = dma.vmem_to_hbm [thread:$0]  (%p5288_p4), %s3705_s19, 32, %s3702_s26, %s3686_s27  }
 0x223 PF: > { %p4956_p0 = scmp.ge.s32.totalorder %s5225_s17, 2  ;;  %s3729_s10 = sand.u32 1, %s5205_s12  }
 0x224   : > { %s3730_s11 = scalar_lea.sflag [#allocation3], %s3729_s10 }
 0x225   : > { %p4953_p1 = pnand %p4956_p0, %p5295_p8 }
 0x227   : > { %p4954_p2 = pneg %p4953_p1 }
 0x229   : > { %5200 = dma.done.wait (%p4954_p2), %s3730_s11, 32  }
 0x22a   : > { %5202 = vsyncadd (%p4954_p2), %s3730_s11, 4294967264  ;;  %s17_s17 = sadd.s32 1, %s5225_s17   ;;  %s6333_s12 = smov %s5209_s13 }
 0x22b   : > { %p14_p3 = scmp.ge.s32.totalorder %s17_s17, 4   ;;  %s6334_s13 = smov %s5213_s14 }
 0x22c   : > { %s6335_s14 = smov %s5301_s25  ;;  %s6336_s15 = smov %s5221_s16 }
 0x22d   : > { %s6337_s16 = smov %s6339_s20  ;;  %16 = sbr.rel (!%p14_p3) target bundleno = 4 (0x4), region = 92 }
 0x232   :  { %3735 = vsyncpa [#allocation3], 1 }
 0x233   :  { %3737 = vsyncpa [#allocation3 + $0x1], 1 }

</bundles_post_ra>
